<compile_context>
chip_gen: v7x
topology: tpu7x:2x2x1
jax: 0.10.0
libtpu: 0.0.40
codegen_flags: <defaults>
</compile_context>

<pallas_src>
import functools

import jax
import jax.numpy as jnp
from jax.experimental import pallas as pl
from jax.experimental.pallas import tpu as pltpu

_HIGH = jax.lax.Precision.HIGHEST   # near-f32 MXU passes for weight / pool dots


# ----------------------------------------------------------------------------
# Fused GINE-stack kernel.  grid = (num_layers, num_edge_tiles)
# inputs : src [Ep,1] i32, dst [1,Ep] i32, batch [1,Np] i32,
#          z0 [Np,Hp] f32, e [Ep,Hp] f32 (edge-tiled), pert [Np,Hp] f32,
#          W1 [L,Hp,H2p] f32, B1 [L,1,H2p] f32, W2 [L,H2p,Hp] f32, B2 [L,1,Hp] f32
# outputs: z_out [L,Np,Hp] f32, g_out [L,Gp,Hp] f32
# scratch: zbuf [2,Np,Hp] f32 (layer-resident node features, double buffered),
#          agg  [Np,Hp]  f32 (edge-reduction accumulator)
# ----------------------------------------------------------------------------
def gine_stack_kernel(src_ref, dst_ref, batch_ref, z0_ref, e_ref, pert_ref,
                      w1_ref, b1_ref, w2_ref, b2_ref,
                      zout_ref, gout_ref,
                      zbuf, agg):
    l = pl.program_id(0)           # layer index (sequential)
    et = pl.program_id(1)          # edge tile index (reduction axis)
    n_l = pl.num_programs(0)
    n_et = pl.num_programs(1)

    # Load the encoder output into the resident z buffer at the very first step.
    @pl.when(jnp.logical_and(l == 0, et == 0))
    def _():
        zbuf[0] = z0_ref[...]

    # Zero the aggregation accumulator at the start of each layer.
    @pl.when(et == 0)
    def _():
        agg[...] = jnp.zeros_like(agg)

    cur = l % 2
    z_cur = zbuf[cur]                                   # [Np, Hp] f32 (resident)

    TE = src_ref.shape[0]
    Np = z_cur.shape[0]

    # ---- message + scatter-add for this edge tile (MXU via in-kernel one-hots)
    # gather one-hot: gmat[e, n] = 1 iff src[e] == n
    gmat = (jax.lax.broadcasted_iota(jnp.int32, (TE, Np), 1)
            == src_ref[...]).astype(jnp.float32)
    zsrc = jnp.dot(gmat, z_cur, preferred_element_type=jnp.float32)       # [TE,Hp]
    msg = jnp.maximum(zsrc + e_ref[...], 0.0)                             # relu(z_src + e)
    # scatter one-hot: smat[n, e] = 1 iff dst[e] == n  (padded edges have dst = -1)
    smat = (jax.lax.broadcasted_iota(jnp.int32, (Np, TE), 0)
            == dst_ref[...]).astype(jnp.float32)
    agg[...] += jnp.dot(smat, msg, preferred_element_type=jnp.float32)    # [Np,Hp]

    # ---- epilogue on the last edge tile: GINE MLP (BN folded) + relu + pool
    @pl.when(et == n_et - 1)
    def _():
        h = z_cur + agg[...]                             # (1+eps)*z + agg, eps = 0
        h1 = jnp.dot(h, w1_ref[...], preferred_element_type=jnp.float32,
                     precision=_HIGH) + b1_ref[...]
        h1 = jnp.maximum(h1, 0.0)                        # Linear1 + folded BN1 + ReLU
        out = jnp.dot(h1, w2_ref[...], preferred_element_type=jnp.float32,
                      precision=_HIGH) + b2_ref[...]     # Linear2 + folded BN2
        # layer-0 perturbation (applied before relu and pooling, as in reference)
        out = out + (l == 0).astype(out.dtype) * pert_ref[...]
        # relu on all but the last layer (dropout = identity in eval), branch-free:
        is_last = (l == n_l - 1).astype(out.dtype)
        out = jnp.maximum(out, 0.0) + is_last * jnp.minimum(out, 0.0)
        zout_ref[...] = out
        # global_add_pool via in-kernel one-hot matmul (padded nodes have batch = -1)
        pmat = (jax.lax.broadcasted_iota(jnp.int32, (gout_ref.shape[0], Np), 0)
                == batch_ref[...]).astype(jnp.float32)
        gout_ref[...] = jnp.dot(pmat, out, preferred_element_type=jnp.float32,
                                precision=_HIGH)
        # keep the updated node features resident for the next layer
        zbuf[1 - cur] = out


# ----------------------------------------------------------------------------
# Parameter construction (deterministic, synthetic)
# ----------------------------------------------------------------------------
ATOM_VOCABS = (10, 5, 7)   # synthetic "full_atom_feature_dims"
BOND_VOCABS = (6, 4)       # synthetic "full_bond_feature_dims"
BN_EPS = 1e-5


def fold_bn(gamma, beta, mean, var):
    scale = gamma / jnp.sqrt(var + BN_EPS)
    shift = beta - mean * scale
    return scale[None, :], shift[None, :]


def make_params(key, hidden_dim, num_layers):
    params = {"atom_emb": [], "bond_emb": [], "layers": []}
    for v in ATOM_VOCABS:
        key, k = jax.random.split(key)
        params["atom_emb"].append(jax.random.normal(k, (v, hidden_dim)) * 0.1)
    for v in BOND_VOCABS:
        key, k = jax.random.split(key)
        params["bond_emb"].append(jax.random.normal(k, (v, hidden_dim)) * 0.1)
    H = hidden_dim
    for _ in range(num_layers):
        keys = jax.random.split(key, 13)
        key = keys[0]
        w1 = jax.random.normal(keys[1], (H, 2 * H)) * 0.1
        b1 = jax.random.normal(keys[2], (1, 2 * H)) * 0.05
        w2 = jax.random.normal(keys[3], (2 * H, H)) * 0.1
        b2 = jax.random.normal(keys[4], (1, H)) * 0.05
        s1, t1 = fold_bn(jax.random.uniform(keys[5], (2 * H,), minval=0.5, maxval=1.5),
                         jax.random.normal(keys[6], (2 * H,)) * 0.05,
                         jax.random.normal(keys[7], (2 * H,)) * 0.05,
                         jax.random.uniform(keys[8], (2 * H,), minval=0.5, maxval=1.5))
        s2, t2 = fold_bn(jax.random.uniform(keys[9], (H,), minval=0.5, maxval=1.5),
                         jax.random.normal(keys[10], (H,)) * 0.05,
                         jax.random.normal(keys[11], (H,)) * 0.05,
                         jax.random.uniform(keys[12], (H,), minval=0.5, maxval=1.5))
        params["layers"].append(dict(w1=w1, b1=b1, s1=s1, t1=t1,
                                     w2=w2, b2=b2, s2=s2, t2=t2))
    return params


def _round_up(x, m):
    return (x + m - 1) // m * m


def _fold_and_stack(layers, H, Hp, H2p):
    """Fold eval-BN affine into the linear weights, pad to lane-dense shapes."""
    W1, B1, W2, B2 = [], [], [], []
    for lp in layers:
        w1f = lp["w1"] * lp["s1"]                       # [H, 2H]  column-scaled
        b1f = lp["b1"] * lp["s1"] + lp["t1"]            # [1, 2H]
        w2f = lp["w2"] * lp["s2"]                       # [2H, H]
        b2f = lp["b2"] * lp["s2"] + lp["t2"]            # [1, H]
        W1.append(jnp.zeros((Hp, H2p), jnp.float32).at[:H, :2 * H].set(w1f))
        B1.append(jnp.zeros((1, H2p), jnp.float32).at[:, :2 * H].set(b1f))
        W2.append(jnp.zeros((H2p, Hp), jnp.float32).at[:2 * H, :H].set(w2f))
        B2.append(jnp.zeros((1, Hp), jnp.float32).at[:, :H].set(b2f))
    return (jnp.stack(W1), jnp.stack(B1), jnp.stack(W2), jnp.stack(B2))


# ----------------------------------------------------------------------------
# Full GConv forward: encoders + padding in JAX glue, whole layer stack in one
# fused Pallas call.
# ----------------------------------------------------------------------------
@functools.partial(jax.jit, static_argnames=("num_graphs", "edge_tile"))
def gconv_forward(params, x, edge_index, edge_attr, batch, num_graphs,
                  perturb=None, edge_tile=128):
    # AtomEncoder / BondEncoder: sum of per-feature embedding lookups (glue)
    z0 = sum(jnp.take(params["atom_emb"][i], x[:, i], axis=0)
             for i in range(len(ATOM_VOCABS)))
    e = sum(jnp.take(params["bond_emb"][i], edge_attr[:, i], axis=0)
            for i in range(len(BOND_VOCABS)))

    N, H = z0.shape
    E = e.shape[0]
    L = len(params["layers"])
    Hp = _round_up(H, 128)            # lane-dense feature width
    H2p = _round_up(2 * H, 128)       # lane-dense hidden width of the GINE MLP
    Np = _round_up(N, 8)
    Ep = _round_up(E, edge_tile)
    Gp = _round_up(num_graphs, 8)
    Et = Ep // edge_tile

    src, dst = edge_index[0].astype(jnp.int32), edge_index[1].astype(jnp.int32)

    # Padded operands.  Padded edges: src -> 0 (harmless), dst -> -1 (never
    # matches a node id, so they contribute nothing).  Padded nodes: batch -> -1.
    z0p = jnp.zeros((Np, Hp), jnp.float32).at[:N, :H].set(z0)
    ep = jnp.zeros((Ep, Hp), jnp.float32).at[:E, :H].set(e)
    src_p = jnp.zeros((Ep, 1), jnp.int32).at[:E, 0].set(src)
    dst_p = jnp.full((1, Ep), -1, jnp.int32).at[0, :E].set(dst)
    batch_p = jnp.full((1, Np), -1, jnp.int32).at[0, :N].set(batch.astype(jnp.int32))
    pert = jnp.zeros((Np, Hp), jnp.float32)
    if perturb is not None:
        pert = pert.at[:N, :H].set(perturb)

    W1, B1, W2, B2 = _fold_and_stack(params["layers"], H, Hp, H2p)

    z_lay, g_lay = pl.pallas_call(
        gine_stack_kernel,
        out_shape=(jax.ShapeDtypeStruct((L, Np, Hp), jnp.float32),
                   jax.ShapeDtypeStruct((L, Gp, Hp), jnp.float32)),
        grid_spec=pltpu.PrefetchScalarGridSpec(
            num_scalar_prefetch=0,
            grid=(L, Et),                                   # edge reduction is last
            in_specs=[
                pl.BlockSpec((edge_tile, 1), lambda l, et: (et, 0)),     # src
                pl.BlockSpec((1, edge_tile), lambda l, et: (0, et)),     # dst
                pl.BlockSpec((1, Np), lambda l, et: (0, 0)),             # batch
                pl.BlockSpec((Np, Hp), lambda l, et: (0, 0)),            # z0
                pl.BlockSpec((edge_tile, Hp), lambda l, et: (et, 0)),    # e
                pl.BlockSpec((Np, Hp), lambda l, et: (0, 0)),            # perturb
                pl.BlockSpec((None, Hp, H2p), lambda l, et: (l, 0, 0)),  # W1
                pl.BlockSpec((None, 1, H2p), lambda l, et: (l, 0, 0)),   # B1
                pl.BlockSpec((None, H2p, Hp), lambda l, et: (l, 0, 0)),  # W2
                pl.BlockSpec((None, 1, Hp), lambda l, et: (l, 0, 0)),    # B2
            ],
            out_specs=(
                pl.BlockSpec((None, Np, Hp), lambda l, et: (l, 0, 0)),   # z per layer
                pl.BlockSpec((None, Gp, Hp), lambda l, et: (l, 0, 0)),   # pooled per layer
            ),
            scratch_shapes=[
                pltpu.VMEM((2, Np, Hp), jnp.float32),   # resident node features
                pltpu.VMEM((Np, Hp), jnp.float32),      # edge-reduction accumulator
            ],
        ),
        compiler_params=pltpu.CompilerParams(
            # layer axis is sequential (resident z), edge axis is a reduction
            dimension_semantics=("arbitrary", "arbitrary"),
            vmem_limit_bytes=32 * 1024 * 1024,
        ),
    )(src_p, dst_p, batch_p, z0p, ep, pert, W1, B1, W2, B2)

    # Strip padding and lay out as concat(zs, dim=1) / concat(gs, dim=1).
    z_cat = jnp.transpose(z_lay[:, :N, :H], (1, 0, 2)).reshape(N, L * H)
    g_cat = jnp.transpose(g_lay[:, :num_graphs, :H], (1, 0, 2)).reshape(num_graphs, L * H)
    return z_cat, g_cat


# Pure-JAX reference (no Pallas) for verification
def gconv_reference(params, x, edge_index, edge_attr, batch, num_graphs, perturb=None):
    z = sum(jnp.take(params["atom_emb"][i], x[:, i], axis=0)
            for i in range(len(ATOM_VOCABS)))
    e = sum(jnp.take(params["bond_emb"][i], edge_attr[:, i], axis=0)
            for i in range(len(BOND_VOCABS)))
    src, dst = edge_index[0], edge_index[1]
    N = z.shape[0]
    num_layers = len(params["layers"])
    zs, gs = [], []
    for l, lp in enumerate(params["layers"]):
        msg = jnp.maximum(z[src] + e, 0.0)
        agg = jax.ops.segment_sum(msg, dst, num_segments=N)
        h = z + agg
        h1 = jnp.maximum((h @ lp["w1"] + lp["b1"]) * lp["s1"] + lp["t1"], 0.0)
        out = (h1 @ lp["w2"] + lp["b2"]) * lp["s2"] + lp["t2"]
        if l == 0 and perturb is not None:
            out = out + perturb
        if l != num_layers - 1:
            out = jnp.maximum(out, 0.0)
        z = out
        zs.append(z)
        gs.append(jax.ops.segment_sum(z, batch, num_segments=num_graphs))
    return jnp.concatenate(zs, axis=1), jnp.concatenate(gs, axis=1)


if __name__ == "__main__":
    HIDDEN = 32
    NUM_LAYERS = 2
    N_NODES = 24
    N_EDGES = 200          # > 128 so the in-kernel edge reduction runs 2 tiles
    N_GRAPHS = 2

    key = jax.random.PRNGKey(0)
    kp, kx, ke, ks, kd, kq = jax.random.split(key, 6)

    params = make_params(kp, HIDDEN, NUM_LAYERS)

    # integer categorical node / bond features (OGB-style)
    x = jnp.stack([jax.random.randint(jax.random.fold_in(kx, i), (N_NODES,), 0, v)
                   for i, v in enumerate(ATOM_VOCABS)], axis=1)                 # [N, 3] int32
    edge_attr = jnp.stack([jax.random.randint(jax.random.fold_in(ke, i), (N_EDGES,), 0, v)
                           for i, v in enumerate(BOND_VOCABS)], axis=1)         # [E, 2] int32
    src = jax.random.randint(ks, (N_EDGES,), 0, N_NODES)
    dst = jax.random.randint(kd, (N_EDGES,), 0, N_NODES)
    edge_index = jnp.stack([src, dst], axis=0)                                  # [2, E]
    batch = jnp.concatenate([jnp.zeros(N_NODES // 2, jnp.int32),
                             jnp.ones(N_NODES - N_NODES // 2, jnp.int32)])      # [N]

    # --- no-perturb path ---
    z_out, g_out = gconv_forward(params, x, edge_index, edge_attr, batch,
                                 num_graphs=N_GRAPHS)
    jax.block_until_ready((z_out, g_out))
    z_ref, g_ref = gconv_reference(params, x, edge_index, edge_attr, batch, N_GRAPHS)

    assert z_out.shape == (N_NODES, NUM_LAYERS * HIDDEN)
    assert g_out.shape == (N_GRAPHS, NUM_LAYERS * HIDDEN)
    assert jnp.allclose(z_out, z_ref, rtol=2e-2, atol=2e-2), "node output mismatch"
    assert jnp.allclose(g_out, g_ref, rtol=2e-2, atol=2e-2), "pooled output mismatch"

    # --- perturb path (layer-0 perturbation applied in-kernel before relu/pool) ---
    perturb = 0.1 * jax.random.normal(kq, (N_NODES, HIDDEN))
    z_out_p, g_out_p = gconv_forward(params, x, edge_index, edge_attr, batch,
                                     num_graphs=N_GRAPHS, perturb=perturb)
    jax.block_until_ready((z_out_p, g_out_p))
    z_ref_p, g_ref_p = gconv_reference(params, x, edge_index, edge_attr, batch,
                                       N_GRAPHS, perturb=perturb)
    assert jnp.allclose(z_out_p, z_ref_p, rtol=2e-2, atol=2e-2), "perturbed node mismatch"
    assert jnp.allclose(g_out_p, g_ref_p, rtol=2e-2, atol=2e-2), "perturbed pooled mismatch"

    print("KERNEL_OK")
</pallas_src>

<mosaic_0001>
module attributes {stable_mosaic.version = 11 : i64} {
  func.func @gine_stack_kernel(%arg0: i32, %arg1: i32, %arg2: memref<128x1xi32, #tpu.memory_space<vmem>>, %arg3: memref<1x128xi32, #tpu.memory_space<vmem>>, %arg4: memref<1x24xi32, #tpu.memory_space<vmem>>, %arg5: memref<24x128xf32, #tpu.memory_space<vmem>>, %arg6: memref<128x128xf32, #tpu.memory_space<vmem>>, %arg7: memref<24x128xf32, #tpu.memory_space<vmem>>, %arg8: memref<1x128x128xf32, #tpu.memory_space<vmem>>, %arg9: memref<1x1x128xf32, #tpu.memory_space<vmem>>, %arg10: memref<1x128x128xf32, #tpu.memory_space<vmem>>, %arg11: memref<1x1x128xf32, #tpu.memory_space<vmem>>, %arg12: memref<1x24x128xf32, #tpu.memory_space<vmem>>, %arg13: memref<1x8x128xf32, #tpu.memory_space<vmem>>, %arg14: memref<2x24x128xf32, #tpu.memory_space<vmem>>, %arg15: memref<24x128xf32, #tpu.memory_space<vmem>>) attributes {dimension_semantics = [#tpu.dimension_semantics<arbitrary>, #tpu.dimension_semantics<arbitrary>], iteration_bounds = array<i64: 2, 2>, scalar_prefetch = 0 : i64, scratch_operands = 2 : i64, tpu.core_type = #tpu.core_type<tc>, window_params = [{transform_indices = @transform_0, window_bounds = array<i64: 128, 1>}, {transform_indices = @transform_1, window_bounds = array<i64: 1, 128>}, {pipeline_mode = #tpu.pipeline_mode<synchronous>, transform_indices = @transform_2, window_bounds = array<i64: 1, 24>}, {pipeline_mode = #tpu.pipeline_mode<synchronous>, transform_indices = @transform_3, window_bounds = array<i64: 24, 128>}, {transform_indices = @transform_4, window_bounds = array<i64: 128, 128>}, {pipeline_mode = #tpu.pipeline_mode<synchronous>, transform_indices = @transform_5, window_bounds = array<i64: 24, 128>}, {transform_indices = @transform_6, window_bounds = array<i64: 1, 128, 128>}, {transform_indices = @transform_7, window_bounds = array<i64: 1, 1, 128>}, {transform_indices = @transform_8, window_bounds = array<i64: 1, 128, 128>}, {transform_indices = @transform_9, window_bounds = array<i64: 1, 1, 128>}, {transform_indices = @transform_10, window_bounds = array<i64: 1, 24, 128>}, {transform_indices = @transform_11, window_bounds = array<i64: 1, 8, 128>}]} {
    %c0_i32 = arith.constant 0 : i32
    %0 = arith.cmpi eq, %arg0, %c0_i32 : i32
    %c0_i32_0 = arith.constant 0 : i32
    %1 = arith.cmpi eq, %arg1, %c0_i32_0 : i32
    %2 = arith.andi %0, %1 : i1
    %3 = arith.extui %2 : i1 to i32
    %c0_i32_1 = arith.constant 0 : i32
    %4 = arith.cmpi ne, %3, %c0_i32_1 : i32
    scf.if %4 {
      %c0_23 = arith.constant 0 : index
      %c0_24 = arith.constant 0 : index
      %45 = vector.load %arg5[%c0_23, %c0_24] : memref<24x128xf32, #tpu.memory_space<vmem>>, vector<24x128xf32>
      %c0_25 = arith.constant 0 : index
      %c0_26 = arith.constant 0 : index
      %c0_27 = arith.constant 0 : index
      %46 = vector.load %arg14[%c0_25, %c0_26, %c0_27] : memref<2x24x128xf32, #tpu.memory_space<vmem>>, vector<1x24x128xf32>
      %47 = vector.shape_cast %46 : vector<1x24x128xf32> to vector<24x128xf32>
      %48 = vector.shape_cast %45 : vector<24x128xf32> to vector<1x24x128xf32>
      tpu.vector_store %arg14[%c0_25, %c0_26, %c0_27], %48 {strides = array<i32>} : memref<2x24x128xf32, #tpu.memory_space<vmem>>, vector<1x24x128xf32>,
    } else {
    }
    %c0_i32_2 = arith.constant 0 : i32
    %5 = arith.cmpi eq, %arg1, %c0_i32_2 : i32
    %6 = arith.extui %5 : i1 to i32
    %c0_i32_3 = arith.constant 0 : i32
    %7 = arith.cmpi ne, %6, %c0_i32_3 : i32
    scf.if %7 {
      %cst_23 = arith.constant 0.000000e+00 : f32
      %45 = vector.broadcast %cst_23 : f32 to vector<24x128xf32>
      %c0_24 = arith.constant 0 : index
      %c0_25 = arith.constant 0 : index
      %46 = vector.load %arg15[%c0_24, %c0_25] : memref<24x128xf32, #tpu.memory_space<vmem>>, vector<24x128xf32>
      tpu.vector_store %arg15[%c0_24, %c0_25], %45 {strides = array<i32>} : memref<24x128xf32, #tpu.memory_space<vmem>>, vector<24x128xf32>,
    } else {
    }
    %c2_i32 = arith.constant 2 : i32
    %c0_i32_4 = arith.constant 0 : i32
    %8 = arith.cmpi eq, %c2_i32, %c0_i32_4 : i32
    %c1_i32 = arith.constant 1 : i32
    %9 = arith.select %8, %c1_i32, %c2_i32 : i32
    %10 = arith.remsi %arg0, %9 : i32
    %c0_i32_5 = arith.constant 0 : i32
    %11 = arith.cmpi ne, %10, %c0_i32_5 : i32
    %c0_i32_6 = arith.constant 0 : i32
    %12 = arith.cmpi slt, %10, %c0_i32_6 : i32
    %c0_i32_7 = arith.constant 0 : i32
    %13 = arith.cmpi slt, %9, %c0_i32_7 : i32
    %14 = arith.xori %12, %13 : i1
    %15 = arith.andi %14, %11 : i1
    %16 = arith.addi %10, %9 : i32
    %17 = arith.select %15, %16, %10 : i32
    %18 = arith.index_cast %17 : i32 to index
    %c0 = arith.constant 0 : index
    %c0_8 = arith.constant 0 : index
    %19 = vector.load %arg14[%18, %c0, %c0_8] : memref<2x24x128xf32, #tpu.memory_space<vmem>>, vector<1x24x128xf32>
    %20 = vector.shape_cast %19 : vector<1x24x128xf32> to vector<24x128xf32>
    %21 = tpu.iota {dimensions = array<i32: 1>} : vector<128x24xi32>
    %c0_9 = arith.constant 0 : index
    %c0_10 = arith.constant 0 : index
    %22 = vector.load %arg2[%c0_9, %c0_10] : memref<128x1xi32, #tpu.memory_space<vmem>>, vector<128x1xi32>
    %23 = vector.broadcast %22 : vector<128x1xi32> to vector<128x24xi32>
    %24 = arith.cmpi eq, %21, %23 : vector<128x24xi32>
    %25 = arith.extui %24 : vector<128x24xi1> to vector<128x24xi32>
    %26 = arith.sitofp %25 : vector<128x24xi32> to vector<128x24xf32>
    %cst = arith.constant dense<0.000000e+00> : vector<128x128xf32>
    %27 = tpu.matmul %26, %20, %cst {dimension_numbers = #tpu.dot_dimension_numbers<[1], [0], [0], [1], [0, 0, 1, 1], [], []>} : vector<128x24xf32>, vector<24x128xf32>, vector<128x128xf32> -> vector<128x128xf32>
    %c0_11 = arith.constant 0 : index
    %c0_12 = arith.constant 0 : index
    %28 = vector.load %arg6[%c0_11, %c0_12] : memref<128x128xf32, #tpu.memory_space<vmem>>, vector<128x128xf32>
    %29 = arith.addf %27, %28 : vector<128x128xf32>
    %cst_13 = arith.constant 0.000000e+00 : f32
    %30 = vector.broadcast %cst_13 : f32 to vector<128x128xf32>
    %31 = arith.maximumf %29, %30 : vector<128x128xf32>
    %32 = tpu.iota {dimensions = array<i32: 0>} : vector<24x128xi32>
    %c0_14 = arith.constant 0 : index
    %c0_15 = arith.constant 0 : index
    %33 = vector.load %arg3[%c0_14, %c0_15] : memref<1x128xi32, #tpu.memory_space<vmem>>, vector<1x128xi32>
    %34 = vector.broadcast %33 : vector<1x128xi32> to vector<24x128xi32>
    %35 = arith.cmpi eq, %32, %34 : vector<24x128xi32>
    %36 = arith.extui %35 : vector<24x128xi1> to vector<24x128xi32>
    %37 = arith.sitofp %36 : vector<24x128xi32> to vector<24x128xf32>
    %c0_16 = arith.constant 0 : index
    %c0_17 = arith.constant 0 : index
    %38 = vector.load %arg15[%c0_16, %c0_17] : memref<24x128xf32, #tpu.memory_space<vmem>>, vector<24x128xf32>
    %cst_18 = arith.constant dense<0.000000e+00> : vector<24x128xf32>
    %39 = tpu.matmul %37, %31, %cst_18 {dimension_numbers = #tpu.dot_dimension_numbers<[1], [0], [0], [1], [0, 0, 1, 1], [], []>} : vector<24x128xf32>, vector<128x128xf32>, vector<24x128xf32> -> vector<24x128xf32>
    %40 = arith.addf %38, %39 : vector<24x128xf32>
    %c0_19 = arith.constant 0 : index
    %c0_20 = arith.constant 0 : index
    %41 = vector.load %arg15[%c0_19, %c0_20] : memref<24x128xf32, #tpu.memory_space<vmem>>, vector<24x128xf32>
    tpu.vector_store %arg15[%c0_19, %c0_20], %40 {strides = array<i32>} : memref<24x128xf32, #tpu.memory_space<vmem>>, vector<24x128xf32>,
    %c1_i32_21 = arith.constant 1 : i32
    %42 = arith.cmpi eq, %arg1, %c1_i32_21 : i32
    %43 = arith.extui %42 : i1 to i32
    %c0_i32_22 = arith.constant 0 : i32
    %44 = arith.cmpi ne, %43, %c0_i32_22 : i32
    scf.if %44 {
      %c0_23 = arith.constant 0 : index
      %c0_24 = arith.constant 0 : index
      %45 = vector.load %arg15[%c0_23, %c0_24] : memref<24x128xf32, #tpu.memory_space<vmem>>, vector<24x128xf32>
      %46 = arith.addf %20, %45 : vector<24x128xf32>
      %c0_25 = arith.constant 0 : index
      %c0_26 = arith.constant 0 : index
      %c0_27 = arith.constant 0 : index
      %47 = vector.load %arg8[%c0_25, %c0_26, %c0_27] : memref<1x128x128xf32, #tpu.memory_space<vmem>>, vector<1x128x128xf32>
      %48 = vector.shape_cast %47 : vector<1x128x128xf32> to vector<128x128xf32>
      %cst_28 = arith.constant dense<0.000000e+00> : vector<24x128xf32>
      %49 = tpu.matmul %46, %48, %cst_28 {dimension_numbers = #tpu.dot_dimension_numbers<[1], [0], [0], [1], [0, 0, 1, 1], [], []>, precision = #tpu.contract_precision<fp32>} : vector<24x128xf32>, vector<128x128xf32>, vector<24x128xf32> -> vector<24x128xf32>
      %c0_29 = arith.constant 0 : index
      %c0_30 = arith.constant 0 : index
      %c0_31 = arith.constant 0 : index
      %50 = vector.load %arg9[%c0_29, %c0_30, %c0_31] : memref<1x1x128xf32, #tpu.memory_space<vmem>>, vector<1x1x128xf32>
      %51 = vector.shape_cast %50 : vector<1x1x128xf32> to vector<1x128xf32>
      %52 = vector.broadcast %51 : vector<1x128xf32> to vector<24x128xf32>
      %53 = arith.addf %49, %52 : vector<24x128xf32>
      %cst_32 = arith.constant 0.000000e+00 : f32
      %54 = vector.broadcast %cst_32 : f32 to vector<24x128xf32>
      %55 = arith.maximumf %53, %54 : vector<24x128xf32>
      %c0_33 = arith.constant 0 : index
      %c0_34 = arith.constant 0 : index
      %c0_35 = arith.constant 0 : index
      %56 = vector.load %arg10[%c0_33, %c0_34, %c0_35] : memref<1x128x128xf32, #tpu.memory_space<vmem>>, vector<1x128x128xf32>
      %57 = vector.shape_cast %56 : vector<1x128x128xf32> to vector<128x128xf32>
      %cst_36 = arith.constant dense<0.000000e+00> : vector<24x128xf32>
      %58 = tpu.matmul %55, %57, %cst_36 {dimension_numbers = #tpu.dot_dimension_numbers<[1], [0], [0], [1], [0, 0, 1, 1], [], []>, precision = #tpu.contract_precision<fp32>} : vector<24x128xf32>, vector<128x128xf32>, vector<24x128xf32> -> vector<24x128xf32>
      %c0_37 = arith.constant 0 : index
      %c0_38 = arith.constant 0 : index
      %c0_39 = arith.constant 0 : index
      %59 = vector.load %arg11[%c0_37, %c0_38, %c0_39] : memref<1x1x128xf32, #tpu.memory_space<vmem>>, vector<1x1x128xf32>
      %60 = vector.shape_cast %59 : vector<1x1x128xf32> to vector<1x128xf32>
      %61 = vector.broadcast %60 : vector<1x128xf32> to vector<24x128xf32>
      %62 = arith.addf %58, %61 : vector<24x128xf32>
      %c0_i32_40 = arith.constant 0 : i32
      %63 = arith.cmpi eq, %arg0, %c0_i32_40 : i32
      %64 = arith.extui %63 : i1 to i32
      %65 = arith.sitofp %64 : i32 to f32
      %c0_41 = arith.constant 0 : index
      %c0_42 = arith.constant 0 : index
      %66 = vector.load %arg7[%c0_41, %c0_42] : memref<24x128xf32, #tpu.memory_space<vmem>>, vector<24x128xf32>
      %67 = vector.broadcast %65 : f32 to vector<24x128xf32>
      %68 = arith.mulf %67, %66 : vector<24x128xf32>
      %69 = arith.addf %62, %68 : vector<24x128xf32>
      %c1_i32_43 = arith.constant 1 : i32
      %70 = arith.cmpi eq, %arg0, %c1_i32_43 : i32
      %71 = arith.extui %70 : i1 to i32
      %72 = arith.sitofp %71 : i32 to f32
      %cst_44 = arith.constant 0.000000e+00 : f32
      %73 = vector.broadcast %cst_44 : f32 to vector<24x128xf32>
      %74 = arith.maximumf %69, %73 : vector<24x128xf32>
      %cst_45 = arith.constant 0.000000e+00 : f32
      %75 = vector.broadcast %cst_45 : f32 to vector<24x128xf32>
      %76 = arith.minimumf %69, %75 : vector<24x128xf32>
      %77 = vector.broadcast %72 : f32 to vector<24x128xf32>
      %78 = arith.mulf %77, %76 : vector<24x128xf32>
      %79 = arith.addf %74, %78 : vector<24x128xf32>
      %c0_46 = arith.constant 0 : index
      %c0_47 = arith.constant 0 : index
      %c0_48 = arith.constant 0 : index
      %80 = vector.load %arg12[%c0_46, %c0_47, %c0_48] : memref<1x24x128xf32, #tpu.memory_space<vmem>>, vector<1x24x128xf32>
      %81 = vector.shape_cast %80 : vector<1x24x128xf32> to vector<24x128xf32>
      %82 = vector.shape_cast %79 : vector<24x128xf32> to vector<1x24x128xf32>
      tpu.vector_store %arg12[%c0_46, %c0_47, %c0_48], %82 {strides = array<i32>} : memref<1x24x128xf32, #tpu.memory_space<vmem>>, vector<1x24x128xf32>,
      %83 = tpu.iota {dimensions = array<i32: 0>} : vector<8x24xi32>
      %c0_49 = arith.constant 0 : index
      %c0_50 = arith.constant 0 : index
      %84 = vector.load %arg4[%c0_49, %c0_50] : memref<1x24xi32, #tpu.memory_space<vmem>>, vector<1x24xi32>
      %85 = vector.broadcast %84 : vector<1x24xi32> to vector<8x24xi32>
      %86 = arith.cmpi eq, %83, %85 : vector<8x24xi32>
      %87 = arith.extui %86 : vector<8x24xi1> to vector<8x24xi32>
      %88 = arith.sitofp %87 : vector<8x24xi32> to vector<8x24xf32>
      %cst_51 = arith.constant dense<0.000000e+00> : vector<8x128xf32>
      %89 = tpu.matmul %88, %79, %cst_51 {dimension_numbers = #tpu.dot_dimension_numbers<[1], [0], [0], [1], [0, 0, 1, 1], [], []>, precision = #tpu.contract_precision<fp32>} : vector<8x24xf32>, vector<24x128xf32>, vector<8x128xf32> -> vector<8x128xf32>
      %c0_52 = arith.constant 0 : index
      %c0_53 = arith.constant 0 : index
      %c0_54 = arith.constant 0 : index
      %90 = vector.load %arg13[%c0_52, %c0_53, %c0_54] : memref<1x8x128xf32, #tpu.memory_space<vmem>>, vector<1x8x128xf32>
      %91 = vector.shape_cast %90 : vector<1x8x128xf32> to vector<8x128xf32>
      %92 = vector.shape_cast %89 : vector<8x128xf32> to vector<1x8x128xf32>
      tpu.vector_store %arg13[%c0_52, %c0_53, %c0_54], %92 {strides = array<i32>} : memref<1x8x128xf32, #tpu.memory_space<vmem>>, vector<1x8x128xf32>,
      %c1_i32_55 = arith.constant 1 : i32
      %93 = arith.subi %c1_i32_55, %17 : i32
      %94 = arith.index_cast %93 : i32 to index
      %c0_56 = arith.constant 0 : index
      %c0_57 = arith.constant 0 : index
      %95 = vector.load %arg14[%94, %c0_56, %c0_57] : memref<2x24x128xf32, #tpu.memory_space<vmem>>, vector<1x24x128xf32>
      %96 = vector.shape_cast %95 : vector<1x24x128xf32> to vector<24x128xf32>
      %97 = vector.shape_cast %79 : vector<24x128xf32> to vector<1x24x128xf32>
      tpu.vector_store %arg14[%94, %c0_56, %c0_57], %97 {strides = array<i32>} : memref<2x24x128xf32, #tpu.memory_space<vmem>>, vector<1x24x128xf32>,
    } else {
    }
    return
  }
  func.func @transform_0(%arg0: i32, %arg1: i32) -> (i32, i32) {
    %c0_i32 = arith.constant 0 : i32
    %c0_i32_0 = arith.constant 0 : i32
    return %arg1, %c0_i32 : i32, i32
  }
  func.func @transform_1(%arg0: i32, %arg1: i32) -> (i32, i32) {
    %c0_i32 = arith.constant 0 : i32
    %c0_i32_0 = arith.constant 0 : i32
    return %c0_i32, %arg1 : i32, i32
  }
  func.func @transform_2(%arg0: i32, %arg1: i32) -> (i32, i32) {
    %c0_i32 = arith.constant 0 : i32
    %c0_i32_0 = arith.constant 0 : i32
    %c0_i32_1 = arith.constant 0 : i32
    return %c0_i32, %c0_i32_0 : i32, i32
  }
  func.func @transform_3(%arg0: i32, %arg1: i32) -> (i32, i32) {
    %c0_i32 = arith.constant 0 : i32
    %c0_i32_0 = arith.constant 0 : i32
    %c0_i32_1 = arith.constant 0 : i32
    return %c0_i32, %c0_i32_0 : i32, i32
  }
  func.func @transform_4(%arg0: i32, %arg1: i32) -> (i32, i32) {
    %c0_i32 = arith.constant 0 : i32
    %c0_i32_0 = arith.constant 0 : i32
    return %arg1, %c0_i32 : i32, i32
  }
  func.func @transform_5(%arg0: i32, %arg1: i32) -> (i32, i32) {
    %c0_i32 = arith.constant 0 : i32
    %c0_i32_0 = arith.constant 0 : i32
    %c0_i32_1 = arith.constant 0 : i32
    return %c0_i32, %c0_i32_0 : i32, i32
  }
  func.func @transform_6(%arg0: i32, %arg1: i32) -> (i32, i32, i32) {
    %c0_i32 = arith.constant 0 : i32
    %c0_i32_0 = arith.constant 0 : i32
    %c0_i32_1 = arith.constant 0 : i32
    return %arg0, %c0_i32, %c0_i32_0 : i32, i32, i32
  }
  func.func @transform_7(%arg0: i32, %arg1: i32) -> (i32, i32, i32) {
    %c0_i32 = arith.constant 0 : i32
    %c0_i32_0 = arith.constant 0 : i32
    %c0_i32_1 = arith.constant 0 : i32
    return %arg0, %c0_i32, %c0_i32_0 : i32, i32, i32
  }
  func.func @transform_8(%arg0: i32, %arg1: i32) -> (i32, i32, i32) {
    %c0_i32 = arith.constant 0 : i32
    %c0_i32_0 = arith.constant 0 : i32
    %c0_i32_1 = arith.constant 0 : i32
    return %arg0, %c0_i32, %c0_i32_0 : i32, i32, i32
  }
  func.func @transform_9(%arg0: i32, %arg1: i32) -> (i32, i32, i32) {
    %c0_i32 = arith.constant 0 : i32
    %c0_i32_0 = arith.constant 0 : i32
    %c0_i32_1 = arith.constant 0 : i32
    return %arg0, %c0_i32, %c0_i32_0 : i32, i32, i32
  }
  func.func @transform_10(%arg0: i32, %arg1: i32) -> (i32, i32, i32) {
    %c0_i32 = arith.constant 0 : i32
    %c0_i32_0 = arith.constant 0 : i32
    %c0_i32_1 = arith.constant 0 : i32
    return %arg0, %c0_i32, %c0_i32_0 : i32, i32, i32
  }
  func.func @transform_11(%arg0: i32, %arg1: i32) -> (i32, i32, i32) {
    %c0_i32 = arith.constant 0 : i32
    %c0_i32_0 = arith.constant 0 : i32
    %c0_i32_1 = arith.constant 0 : i32
    return %arg0, %c0_i32, %c0_i32_0 : i32, i32, i32
  }
}

</mosaic_0001>

<bundles_post_ra>
// kernel: gconv_forward.1
= control target key start
LH: loop header
LB: loop body
LE: loop exit
PB: predicated region body
PF: predicated region fallthrough
CT: control target
= control target key end

     0   :  { %s4710_s17 = smov 0   ;;  %s4712_s18 = smov 0   ;;  %s5688_s0 = inlined_call_operand.vmem [shape: s32[256,1], index: 0, kind: input, shape index: {}]   ;;  %s5689_s1 = inlined_call_operand.vmem [shape: s32[1,256], index: 1, kind: input, shape index: {}]   ;;  %s5690_s2 = inlined_call_operand.vmem [shape: s32[1,24], index: 2, kind: input, shape index: {}]   ;;  %s5691_s3 = inlined_call_operand.vmem [shape: f32[24,128], index: 3, kind: input, shape index: {}]   ;;  %s5692_s4 = inlined_call_operand.vmem [shape: f32[256,128], index: 4, kind: input, shape index: {}]   ;;  %s5693_s5 = inlined_call_operand.vmem [shape: f32[24,128], index: 5, kind: input, shape index: {}]   ;;  %s5694_s6 = inlined_call_operand.vmem [shape: f32[2,128,128], index: 6, kind: input, shape index: {}]   ;;  %s5695_s7 = inlined_call_operand.vmem [shape: f32[2,1,128], index: 7, kind: input, shape index: {}]   ;;  %s5696_s8 = inlined_call_operand.vmem [shape: f32[2,128,128], index: 8, kind: input, shape index: {}]   ;;  %s5697_s9 = inlined_call_operand.vmem [shape: f32[2,1,128], index: 9, kind: input, shape index: {}]   ;;  %s5698_s10 = inlined_call_operand.vmem [shape: f32[2,24,128], index: 10, kind: output, shape index: {0}]   ;;  %s5699_s11 = inlined_call_operand.vmem [shape: f32[2,8,128], index: 11, kind: output, shape index: {1}]  }
   0x1   :  { %5719 = sst [smem:[#allocation13_spill]] %s5688_s0  ;;  %s4714_s19 = smov 0  }
   0x2   :  { %5720 = sst [smem:[#allocation14_spill]] %s5690_s2  ;;  %s4716_s20 = smov 0  }
   0x3   :  { %5721 = sst [smem:[#allocation15_spill]] %s5692_s4  ;;  %s4718_s21 = smov 0  }
   0x4   :  { %5722 = sst [smem:[#allocation16_spill]] %s5693_s5 }
   0x5 LB: > { %5723 = sst [smem:[#allocation4_spill]] %s4631_s19  ;;  %s31_s22 = sadd.s32 1, %s4631_s19  ;;  %s4639_s21 = sphi %s4718_s21, %s22_s21   ;;  %s4635_s20 = sphi %s4716_s20, %s5761_s20   ;;  %s4631_s19 = sphi %s4714_s19, %s5760_s19   ;;  %s4627_s18 = sphi %s4712_s18, %s5759_s18   ;;  %s4623_s17 = sphi %s4710_s17, %s5758_s17  }
   0x6   : > { %5724 = sst [smem:[#allocation5_spill]] %s4635_s20  ;;  %s34_s23 = sadd.s32 1, %s4635_s20 }
   0x7   : > { %5725 = sst [smem:[#allocation6_spill]] %s4639_s21  ;;  %p32_p0 = scmp.ge.s32.totalorder %s31_s22, 2 }
   0x8   : > { %p3200_p1 = scmp.ge.s32.totalorder %s4639_s21, 1  ;;  %p408_p2 = scmp.lt.s32.totalorder %s4639_s21, 5 }
   0x9   : > { %s5763_s22 = smov (%p32_p0, %s31_s22), 0  ;;  %s5765_s23 = smov (!%p32_p0, %s34_s23), %s4635_s20 }
   0xa   : > { %5726 = sst [smem:[#allocation7_spill]] %s5763_s22  ;;  %p409_p3 = pnand %p3200_p1, %p408_p2 }
   0xb   : > { %p36_p4 = scmp.ge.s32.totalorder %s5765_s23, 2 }
   0xc   : > { %412 = sbr.rel (%p409_p3) target bundleno = 1703 (0x6a7), region = 60 }
   0xd   : > { %s5767_s23 = smov (%p36_p4, %s5765_s23), 0 }
   0xe   : > { %5727 = sst [smem:[#allocation8_spill]] %s5767_s23 }
  0x13   : > { %s3201_s24 = sshll.u32 %s4623_s17, 4  ;;  %p482_p5 = scmp.lt.s32.totalorder %s4623_s17, 1 }
  0x14   : > { %p477_p6 = scmp.lt.s32.totalorder %s3201_s24, 31  ;;  %p491_p7 = scmp.lt.s32.totalorder %s4627_s18, 1 }
  0x15   : > { %s4748_s25 = scalar_select %p482_p5, %s4623_s17, 1 }
  0x16   : > { %s5769_s24 = smov (!%p477_p6, %s3201_s24), 31  ;;  %p516_p8 = scmp.eq.s32.totalorder %s4627_s18, 0 }
  0x17   : > { %s3202_s29 = sshll.u32 %s5769_s24, 3  ;;  %p517_p9 = scmp.eq.s32.totalorder %s4623_s17, 0 }
  0x18   : > { %s5728_s0 = sld [smem:[#allocation13_spill]]  ;;  %s5729_s4 = sld [smem:[#allocation15_spill]] }
  0x19   : > { %s4767_s23 = scalar_select %p491_p7, %s4627_s18, 1 }
  0x1a   : > { %p518_p10 = pnand %p517_p9, %p516_p8 }
  0x1b   : > { %s3264_s24 = sshll.u32 %s4767_s23, 7  ;;  %s498_s30 = scalar_lea.vmem %s5695_s7, %s4767_s23  ;;  %v522_v0 = vld [vmem:[%s5691_s3] sm:$0xff] (!%p518_p10)  ;;  %v523_v1 = vld [vmem:[%s5691_s3 + $0x8] sm:$0xff] (!%p518_p10)  ;;  %v524_v2 = vld [vmem:[%s5691_s3 + $0x10] sm:$0xff] (!%p518_p10) }
  0x1c   : > { %s4779_s14 = scalar_lea.vmem %s5694_s6, %s3264_s24  ;;  %s4549_s19 = smul.u32 24, %s4767_s23  ;;  %525 = vst [vmem:[#allocation2] sm:$0xff] (!%p518_p10), %v522_v0  ;;  %526 = vst [vmem:[#allocation2 + $0x8] sm:$0xff] (!%p518_p10), %v523_v1 }
  0x1d   : > { %s3210_s21 = sshll.u32 %s4767_s23, 3  ;;  %521 = sbr.rel (%p518_p10) target bundleno = 36 (0x24), region = 64  ;;  %527 = vst [vmem:[#allocation2 + $0x10] sm:$0xff] (!%p518_p10), %v524_v2 }
  0x1e   : > { %s4759_s13 = scalar_lea.vmem %s5728_s0, %s3202_s29  ;;  %s4764_s16 = scalar_lea.vmem %s5729_s4, %s3202_s29 }
  0x1f   : > { %s4784_s0 = scalar_lea.vmem %s5696_s8, %s3264_s24  ;;  %s4795_s26 = scalar_lea.vmem %s5698_s10, %s4549_s19 }
  0x20   : > { %s4800_s12 = scalar_lea.vmem %s5699_s11, %s3210_s21 }
  0x24 PF: > { %p3211_p11 = scmp.ne.s32.totalorder %s4623_s17, 0 }
  0x25   : > { %v4641_v3 = vmov (!%p3211_p11), 0.0  }
  0x26   : > { %530 = sbr.rel (%p3211_p11) target bundleno = 45 (0x2d), region = 68  ;;  %531 = vst [vmem:[#allocation3] sm:$0xff] (!%p3211_p11), %v4641_v3  ;;  %532 = vst [vmem:[#allocation3 + $0x8] sm:$0xff] (!%p3211_p11), %v4641_v3 }
  0x27   : > { %533 = vst [vmem:[#allocation3 + $0x10] sm:$0xff] (!%p3211_p11), %v4641_v3 }
  0x2d PF: > { %v555_v4 = vld [vmem:[%s4759_s13 + $0x10] sm:$0xff]  ;;  %v553_v5 = vld [vmem:[%s4759_s13] sm:$0xff]  ;;  %v4642_v6 = vmov 0   ;;  %p534_p12 = scmp.lt.s32.totalorder %s4627_s18, 0  ;;  %s535_s2 = ssub.s32 0, %s4627_s18  ;;  %v556_v7 = vld [vmem:[%s4759_s13 + $0x18] sm:$0xff]  ;;  %v551_v25 = vlaneseq }
  0x2e   : > { %4600 = vset.pattern.permute.xlu1 %v4642_v6  ;;  %4599 = vset.pattern.permute.xlu0 %v4642_v6  ;;  %s3212_s5 = smin.u32 %s4627_s18, %s535_s2  ;;  %v554_v8 = vld [vmem:[%s4759_s13 + $0x8] sm:$0xff]  ;;  %v557_v10 = vld [vmem:[%s4759_s13 + $0x20] sm:$0xff]  ;;  %v560_v11 = vld [vmem:[%s4759_s13 + $0x38] sm:$0xff]  ;;  %vm681_vm0 = vcmask 195584   ;;  %v4643_v29 = vmov 0.0   ;;  %v4644_v60 = vmov 0.0|0.0  }
  0x2f   : > { %576 = vperm.xlu1 %4600, %v555_v4   ;;  %570 = vperm.xlu0 %4599, %v553_v5   ;;  %s537_s19 = sand.u32 1, %s3212_s5   ;;  %v558_v9 = vld [vmem:[%s4759_s13 + $0x28] sm:$0xff]  ;;  %v559_v12 = vld [vmem:[%s4759_s13 + $0x30] sm:$0xff]  ;;  %v561_v16 = vld [vmem:[%s4759_s13 + $0x40] sm:$0xff]  ;;  %v4845_v26 = vand.u32 127, %v551_v25  ;;  %p3254_p0 = scmp.ne.s32.totalorder %s4623_s17, 1 }
  0x30   : > { %s538_s20 = ssub.s32 0, %s537_s19  ;;  %v562_v15 = vld [vmem:[%s4759_s13 + $0x48] sm:$0xff]  ;;  %v564_v19 = vld [vmem:[%s4759_s13 + $0x58] sm:$0xff]  ;;  %v563_v20 = vld [vmem:[%s4759_s13 + $0x50] sm:$0xff]  ;;  %4177 = vmatprep.subr.bf16.mxu1 %v4644_v60 }
  0x31   : > { %s5771_s20 = smov (!%p534_p12, %s538_s20), %s537_s19  ;;  %v566_v21 = vld [vmem:[%s4759_s13 + $0x68] sm:$0xff]  ;;  %v565_v22 = vld [vmem:[%s4759_s13 + $0x60] sm:$0xff]  ;;  %v568_v23 = vld [vmem:[%s4759_s13 + $0x78] sm:$0xff] }
  0x32   : > { %p3214_p13 = scmp.lt.s32.totalorder %s5771_s20, 0  ;;  %s544_s21 = sadd.s32 2, %s5771_s20  ;;  %v567_v24 = vld [vmem:[%s4759_s13 + $0x70] sm:$0xff]  ;;  %v666_v61 = vld [vmem:[%s4764_s16 + $0x8] sm:$0xff]  ;;  %v665_v62 = vld [vmem:[%s4764_s16] sm:$0xff] }
  0x33   : > { %579 = vperm.xlu1 %4600, %v556_v7   ;;  %573 = vperm.xlu0 %4599, %v554_v8   ;;  %v668_v3 = vld [vmem:[%s4764_s16 + $0x18] sm:$0xff]  ;;  %v667_v5 = vld [vmem:[%s4764_s16 + $0x10] sm:$0xff] }
  0x34   : > { %s5773_s21 = smov (!%p3214_p13, %s544_s21), %s5771_s20 }
  0x35   : > { %s546_s27 = smul.u32 24, %s5773_s21 }
  0x37   : > { %585 = vperm.xlu1 %4600, %v558_v9   ;;  %582 = vperm.xlu0 %4599, %v557_v10   ;;  %s547_s28 = scalar_lea.vmem [#allocation2], %s546_s27 }
  0x38   : > { %v4826_v13 = vld [vmem:[%s547_s28] sm:$0xff]  ;;  %v4828_v14 = vld [vmem:[%s547_s28 + $0x8] sm:$0xff]  ;;  %v4834_v18 = vld [vmem:[%s547_s28 + $0x10] sm:$0xff] }
  0x39   : > { %v4173_v17 = vpack.c.bf16 %v4828_v14, %v4826_v13 }
  0x3b   : > { %591 = vperm.xlu1 %4600, %v560_v11   ;;  %588 = vperm.xlu0 %4599, %v559_v12   ;;  %v670_v11 = vld [vmem:[%s4764_s16 + $0x28] sm:$0xff] }
  0x3c   : > { %4174 = vmatprep.subr.bf16.mxu0 %v4173_v17 }
  0x3d   : > { %4176 = vmatpush3.bf16.msra.mxu0 %v4173_v17 }
  0x3e   : > { %3560 = vmatprep.subr.mxu0 %v4834_v18 }
  0x3f   : > { %597 = vperm.xlu1 %4600, %v562_v15   ;;  %594 = vperm.xlu0 %4599, %v561_v16   ;;  %v669_v16 = vld [vmem:[%s4764_s16 + $0x20] sm:$0xff] }
  0x41   : > { %3561 = vmatpush3.msra.mxu0 %v4834_v18 }
  0x43   : > { %603 = vperm.xlu1 %4600, %v564_v19   ;;  %600 = vperm.xlu0 %4599, %v563_v20  }
  0x47   : > { %609 = vperm.xlu1 %4600, %v566_v21   ;;  %606 = vperm.xlu0 %4599, %v565_v22  }
  0x4b   : > { %615 = vperm.xlu1 %4600, %v568_v23   ;;  %612 = vperm.xlu0 %4599, %v567_v24   ;;  %v672_v24 = vld [vmem:[%s4764_s16 + $0x38] sm:$0xff] }
  0xae   : > { %v577_v27 = vpop.permute.xlu1 %576  ;;  %v571_v28 = vpop.permute.xlu0 %570 }
  0xaf   : > { %vm617_vm1 = vcmp.eq.s32.totalorder %v4845_v26, %v571_v28  ;;  %vm619_vm2 = vcmp.eq.s32.totalorder %v4845_v26, %v577_v27  ;;  %v671_v27 = vld [vmem:[%s4764_s16 + $0x30] sm:$0xff] }
  0xb0   : > { %v3215_v30 = vsel %vm617_vm1, 1.0, %v4643_v29  ;;  %v3217_v33 = vsel %vm619_vm2, 1.0, %v4643_v29  ;;  %vm4645_vm2 = vmmov 0  }
  0xb1   : > { %3562 = vmatprep.mubr.msk.f32.mxu0 %vm681_vm0, %v3215_v30  ;;  %3618 = vmatprep.mubr.msk.f32.mxu1 %vm4645_vm2, %v4643_v29 }
  0xb2   : > { %v580_v31 = vpop.permute.xlu1 %579  ;;  %v574_v32 = vpop.permute.xlu0 %573 }
  0xb3   : > { %vm618_vm3 = vcmp.eq.s32.totalorder %v4845_v26, %v574_v32  ;;  %vm620_vm4 = vcmp.eq.s32.totalorder %v4845_v26, %v580_v31 }
  0xb4   : > { %v3216_v34 = vsel %vm618_vm3, 1.0, %v4643_v29  ;;  %v3218_v37 = vsel %vm620_vm4, 1.0, %v4643_v29 }
  0xb5   : > { %3563 = vmatmul.mubr.msk.f32.vlgmr.msra.gmra.mrb[0].mxu0 %vm681_vm0, %v3216_v34 }
  0xb6   : > { %v586_v35 = vpop.permute.xlu1 %585  ;;  %v583_v36 = vpop.permute.xlu0 %582  ;;  %3565 = vmatprep.mubr.msk.f32.mxu0 %vm681_vm0, %v3217_v33 }
  0xb7   : > { %vm621_vm5 = vcmp.eq.s32.totalorder %v4845_v26, %v583_v36  ;;  %vm622_vm6 = vcmp.eq.s32.totalorder %v4845_v26, %v586_v35  ;;  %v674_v35 = vld [vmem:[%s4764_s16 + $0x48] sm:$0xff] }
  0xb8   : > { %v3219_v38 = vsel %vm621_vm5, 1.0, %v4643_v29  ;;  %v3220_v41 = vsel %vm622_vm6, 1.0, %v4643_v29 }
  0xb9   : > { %3566 = vmatmul.mubr.msk.f32.gmra.mrb[2].mxu0 %vm681_vm0, %v3218_v37  ;;  %v673_v37 = vld [vmem:[%s4764_s16 + $0x40] sm:$0xff] }
  0xba   : > { %v592_v39 = vpop.permute.xlu1 %591  ;;  %v589_v40 = vpop.permute.xlu0 %588  ;;  %3568 = vmatprep.mubr.msk.f32.mxu0 %vm681_vm0, %v3219_v38 }
  0xbb   : > { %vm623_vm7 = vcmp.eq.s32.totalorder %v4845_v26, %v589_v40  ;;  %vm624_vm8 = vcmp.eq.s32.totalorder %v4845_v26, %v592_v39 }
  0xbc   : > { %v3221_v42 = vsel %vm623_vm7, 1.0, %v4643_v29  ;;  %v3222_v45 = vsel %vm624_vm8, 1.0, %v4643_v29 }
  0xbd   : > { %3569 = vmatmul.mubr.msk.f32.gmra.mrb[4].mxu0 %vm681_vm0, %v3220_v41 }
  0xbe   : > { %v598_v43 = vpop.permute.xlu1 %597  ;;  %v595_v44 = vpop.permute.xlu0 %594  ;;  %3571 = vmatprep.mubr.msk.f32.mxu0 %vm681_vm0, %v3221_v42 }
  0xbf   : > { %vm625_vm9 = vcmp.eq.s32.totalorder %v4845_v26, %v595_v44  ;;  %vm626_vm10 = vcmp.eq.s32.totalorder %v4845_v26, %v598_v43  ;;  %v676_v44 = vld [vmem:[%s4764_s16 + $0x58] sm:$0xff] }
  0xc0   : > { %v3223_v46 = vsel %vm625_vm9, 1.0, %v4643_v29  ;;  %v3224_v49 = vsel %vm626_vm10, 1.0, %v4643_v29 }
  0xc1   : > { %3572 = vmatmul.mubr.msk.f32.gmra.mrb[6].mxu0 %vm681_vm0, %v3222_v45 }
  0xc2   : > { %v604_v47 = vpop.permute.xlu1 %603  ;;  %v601_v48 = vpop.permute.xlu0 %600  ;;  %3574 = vmatprep.mubr.msk.f32.mxu0 %vm681_vm0, %v3223_v46  ;;  %v675_v46 = vld [vmem:[%s4764_s16 + $0x50] sm:$0xff] }
  0xc3   : > { %vm627_vm11 = vcmp.eq.s32.totalorder %v4845_v26, %v601_v48  ;;  %vm628_vm12 = vcmp.eq.s32.totalorder %v4845_v26, %v604_v47 }
  0xc4   : > { %v3225_v50 = vsel %vm627_vm11, 1.0, %v4643_v29  ;;  %v3226_v53 = vsel %vm628_vm12, 1.0, %v4643_v29 }
  0xc5   : > { %3575 = vmatmul.mubr.msk.f32.gmra.mrb[8].mxu0 %vm681_vm0, %v3224_v49 }
  0xc6   : > { %v610_v51 = vpop.permute.xlu1 %609  ;;  %v607_v52 = vpop.permute.xlu0 %606  ;;  %3577 = vmatprep.mubr.msk.f32.mxu0 %vm681_vm0, %v3225_v50 }
  0xc7   : > { %vm629_vm13 = vcmp.eq.s32.totalorder %v4845_v26, %v607_v52  ;;  %vm630_vm14 = vcmp.eq.s32.totalorder %v4845_v26, %v610_v51 }
  0xc8   : > { %v3227_v54 = vsel %vm629_vm13, 1.0, %v4643_v29  ;;  %v3228_v57 = vsel %vm630_vm14, 1.0, %v4643_v29 }
  0xc9   : > { %3578 = vmatmul.mubr.msk.f32.gmra.mrb[10].mxu0 %vm681_vm0, %v3226_v53  ;;  %v678_v53 = vld [vmem:[%s4764_s16 + $0x68] sm:$0xff] }
  0xca   : > { %v616_v55 = vpop.permute.xlu1 %615  ;;  %v613_v56 = vpop.permute.xlu0 %612  ;;  %3580 = vmatprep.mubr.msk.f32.mxu0 %vm681_vm0, %v3227_v54 }
  0xcb   : > { %vm631_vm15 = vcmp.eq.s32.totalorder %v4845_v26, %v613_v56  ;;  %vm632_vm1 = vcmp.eq.s32.totalorder %v4845_v26, %v616_v55  ;;  %v677_v55 = vld [vmem:[%s4764_s16 + $0x60] sm:$0xff] }
  0xcc   : > { %v3229_v58 = vsel %vm631_vm15, 1.0, %v4643_v29  ;;  %v3230_v59 = vsel %vm632_vm1, 1.0, %v4643_v29 }
  0xcd   : > { %3581 = vmatmul.mubr.msk.f32.gmra.mrb[12].mxu0 %vm681_vm0, %v3228_v57 }
  0xce   : > { %3583 = vmatprep.mubr.msk.f32.mxu0 %vm681_vm0, %v3229_v58 }
  0xd1   : > { %3584 = vmatmul.mubr.msk.f32.gmra.mrb[14].mxu0 %vm681_vm0, %v3230_v59 }
 0x188   : > { %v3564_v63 = vpop.f32.mrb[0].mxu0 }
 0x189   : > { %v802_v0 = vadd.f32 %v3564_v63, %v666_v61  ;;  %v796_v1 = vpop.f32.mrb[1].mxu0  ;;  %v680_v63 = vld [vmem:[%s4764_s16 + $0x78] sm:$0xff] }
 0x18a   : > { %v797_v2 = vadd.f32 %v796_v1, %v665_v62  ;;  %v679_v1 = vld [vmem:[%s4764_s16 + $0x70] sm:$0xff]  ;;  %s5731_s16 = scalar_lea.vmem %s5689_s1, %s4748_s25 }
 0x18b   : > { %v876_v4 = vmax.f32 %v802_v0, 0.0 }
 0x18c   : > { %v875_v6 = vmax.f32 %v797_v2, 0.0  ;;  %v3567_v7 = vpop.f32.mrb[2].mxu0 }
 0x18d   : > { %v812_v8 = vadd.f32 %v3567_v7, %v668_v3  ;;  %v806_v9 = vpop.f32.mrb[3].mxu0 }
 0x18e   : > { %v807_v10 = vadd.f32 %v806_v9, %v667_v5  ;;  %v4178_v12 = vpack.c.bf16 %v876_v4, %v875_v6 }
 0x18f   : > { %v878_v15 = vmax.f32 %v812_v8, 0.0 }
 0x190   : > { %v877_v17 = vmax.f32 %v807_v10, 0.0  ;;  %v3570_v19 = vpop.f32.mrb[4].mxu0  ;;  %4179 = vmatpush3.bf16.msra.mxu1 %v4178_v12  ;;  %v4921_v10 = vshrl.u32 %v551_v25, 7 }
 0x191   : > { %v822_v20 = vadd.f32 %v3570_v19, %v670_v11  ;;  %v816_v21 = vpop.f32.mrb[5].mxu0  ;;  %4180 = vmatprep.subr.bf16.mxu1 %v4644_v60  ;;  %v3247_v11 = vld [vmem:[%s5731_s16] ss:$0 sm:$0xff] }
 0x192   : > { %v4181_v22 = vpack.c.bf16 %v878_v15, %v877_v17  ;;  %v817_v23 = vadd.f32 %v816_v21, %v669_v16  ;;  %5730 = vst [vmem:[#allocation9_spill] sm:$0xff] %v4921_v10  ;;  %vm900_vm3 = vcmp.eq.s32.totalorder %v4921_v10, %v3247_v11  ;;  %v893_v15 = vadd.s32 8, %v4921_v10  ;;  %v910_v21 = vld [vmem:[#allocation3 + $0x8] sm:$0xff] }
 0x193   : > { %v880_v26 = vmax.f32 %v822_v20, 0.0  ;;  %v4646_v16 = vmov 1.0   ;;  %v894_v25 = vadd.s32 16, %v4921_v10 }
 0x194   : > { %v879_v28 = vmax.f32 %v817_v23, 0.0  ;;  %v3573_v30 = vpop.f32.mrb[6].mxu0  ;;  %4182 = vmatpush3.bf16.msra.mxu1 %v4181_v22  ;;  %vm901_vm4 = vcmp.eq.s32.totalorder %v893_v15, %v3247_v11 }
 0x195   : > { %v832_v31 = vadd.f32 %v3573_v30, %v672_v24  ;;  %v826_v32 = vpop.f32.mrb[7].mxu0  ;;  %4183 = vmatprep.subr.bf16.mxu1 %v4644_v60  ;;  %vm902_vm5 = vcmp.eq.s32.totalorder %v894_v25, %v3247_v11 }
 0x196   : > { %v4184_v33 = vpack.c.bf16 %v880_v26, %v879_v28  ;;  %v827_v34 = vadd.f32 %v826_v32, %v671_v27  ;;  %v911_v26 = vld [vmem:[#allocation3 + $0x10] sm:$0xff] }
 0x197   : > { %v882_v36 = vmax.f32 %v832_v31, 0.0 }
 0x198   : > { %v881_v38 = vmax.f32 %v827_v34, 0.0  ;;  %v3576_v39 = vpop.f32.mrb[8].mxu0  ;;  %4185 = vmatpush3.bf16.msra.mxu1 %v4184_v33 }
 0x199   : > { %v842_v40 = vadd.f32 %v3576_v39, %v674_v35  ;;  %v836_v41 = vpop.f32.mrb[9].mxu0  ;;  %4186 = vmatprep.subr.bf16.mxu1 %v4644_v60 }
 0x19a   : > { %v4187_v42 = vpack.c.bf16 %v882_v36, %v881_v38  ;;  %v837_v43 = vadd.f32 %v836_v41, %v673_v37 }
 0x19b   : > { %v884_v45 = vmax.f32 %v842_v40, 0.0 }
 0x19c   : > { %v883_v47 = vmax.f32 %v837_v43, 0.0  ;;  %v3579_v48 = vpop.f32.mrb[10].mxu0  ;;  %4188 = vmatpush3.bf16.msra.mxu1 %v4187_v42 }
 0x19d   : > { %v852_v49 = vadd.f32 %v3579_v48, %v676_v44  ;;  %v846_v50 = vpop.f32.mrb[11].mxu0  ;;  %4189 = vmatprep.subr.bf16.mxu1 %v4644_v60 }
 0x19e   : > { %v4190_v51 = vpack.c.bf16 %v884_v45, %v883_v47  ;;  %v847_v52 = vadd.f32 %v846_v50, %v675_v46 }
 0x19f   : > { %v886_v54 = vmax.f32 %v852_v49, 0.0 }
 0x1a0   : > { %v885_v56 = vmax.f32 %v847_v52, 0.0  ;;  %v3582_v57 = vpop.f32.mrb[12].mxu0  ;;  %4191 = vmatpush3.bf16.msra.mxu1 %v4190_v51 }
 0x1a1   : > { %v862_v58 = vadd.f32 %v3582_v57, %v678_v53  ;;  %v856_v59 = vpop.f32.mrb[13].mxu0  ;;  %4192 = vmatprep.subr.bf16.mxu1 %v4644_v60 }
 0x1a2   : > { %v4193_v61 = vpack.c.bf16 %v886_v54, %v885_v56  ;;  %v857_v62 = vadd.f32 %v856_v59, %v677_v55 }
 0x1a3   : > { %v888_v0 = vmax.f32 %v862_v58, 0.0 }
 0x1a4   : > { %v887_v2 = vmax.f32 %v857_v62, 0.0  ;;  %v3585_v3 = vpop.f32.mrb[14].mxu0  ;;  %4194 = vmatpush3.bf16.msra.mxu1 %v4193_v61 }
 0x1a5   : > { %v872_v4 = vadd.f32 %v3585_v3, %v680_v63  ;;  %v866_v5 = vpop.f32.mrb[15].mxu0  ;;  %4195 = vmatprep.subr.bf16.mxu1 %v4644_v60 }
 0x1a6   : > { %v4196_v6 = vpack.c.bf16 %v888_v0, %v887_v2  ;;  %v867_v7 = vadd.f32 %v866_v5, %v679_v1 }
 0x1a7   : > { %v890_v8 = vmax.f32 %v872_v4, 0.0 }
 0x1a8   : > { %v889_v9 = vmax.f32 %v867_v7, 0.0  ;;  %4197 = vmatpush3.bf16.msra.mxu1 %v4196_v6 }
 0x1a9   : > { %4198 = vmatprep.subr.bf16.mxu1 %v4644_v60  ;;  %v909_v60 = vld [vmem:[#allocation3] sm:$0xff] }
 0x1aa   : > { %v4199_v12 = vpack.c.bf16 %v890_v8, %v889_v9 }
 0x1ac   : > { %4200 = vmatpush3.bf16.msra.mxu1 %v4199_v12 }
 0x1af   : > { %3619 = vmatmul.mubr.msk.f32.vlgmr.msra.gmra.mrb[0].mxu1 %vm900_vm3, %v4646_v16 }
 0x1b0   : > { %3621 = vmatprep.mubr.msk.f32.mxu1 %vm4645_vm2, %v4643_v29 }
 0x1b3   : > { %3622 = vmatmul.mubr.msk.f32.gmra.mrb[2].mxu1 %vm901_vm4, %v4646_v16 }
 0x1b4   : > { %3624 = vmatprep.mubr.msk.f32.mxu1 %vm4645_vm2, %v4643_v29 }
 0x1b7   : > { %3625 = vmatmul.mubr.msk.f32.gmra.mrb[4].mxu1 %vm902_vm5, %v4646_v16 }
 0x282   : > { %v978_v17 = vpop.f32.mrb[0].mxu1 }
 0x283   : > { %v992_v19 = vadd.f32 %v978_v17, %v909_v60  ;;  %v3620_v20 = vpop.f32.mrb[1].mxu1 }
 0x285   : > { %995 = vst [vmem:[#allocation3] sm:$0xff] %v992_v19 }
 0x286   : > { %v983_v22 = vpop.f32.mrb[2].mxu1 }
 0x287   : > { %v993_v23 = vadd.f32 %v983_v22, %v910_v21  ;;  %v3623_v24 = vpop.f32.mrb[3].mxu1  ;;  %1001 = sbr.rel (%p3254_p0) target bundleno = 1703 (0x6a7), region = 72 }
 0x289   : > { %996 = vst [vmem:[#allocation3 + $0x8] sm:$0xff] %v993_v23 }
 0x28a   : > { %v988_v27 = vpop.f32.mrb[4].mxu1 }
 0x28b   : > { %v994_v28 = vadd.f32 %v988_v27, %v911_v26  ;;  %v3626_v30 = vpop.f32.mrb[5].mxu1 }
 0x28d   : > { %997 = vst [vmem:[#allocation3 + $0x10] sm:$0xff] %v994_v28 }
 0x28e   : > { %v1008_v29 = vld [vmem:[%s4779_s14] sm:$0xff]  ;;  %v1009_v31 = vld [vmem:[%s4779_s14 + $0x8] sm:$0xff]  ;;  %v1010_v32 = vld [vmem:[%s4779_s14 + $0x10] sm:$0xff]  ;;  %v4647_v33 = vmov 0.0|0.0   ;;  %vm4648_vm6 = vmmov 0   ;;  %v5706_v38 = vmov 0.0  }
 0x28f   : > { %4201 = vmatprep.subr.bf16.mxu0 %v4647_v33  ;;  %v1032_v34 = vand.u32 4294901760, %v1008_v29  ;;  %v1035_v35 = vand.u32 4294901760, %v1009_v31  ;;  %v1011_v36 = vld [vmem:[%s4779_s14 + $0x18] sm:$0xff]  ;;  %v1038_v37 = vand.u32 4294901760, %v1010_v32  ;;  %3659 = vmatprep.mubr.msk.f32.mxu0 %vm4648_vm6, %v5706_v38  ;;  %v1012_v40 = vld [vmem:[%s4779_s14 + $0x20] sm:$0xff]  ;;  %v1013_v41 = vld [vmem:[%s4779_s14 + $0x28] sm:$0xff] }
 0x290   : > { %v1041_v39 = vand.u32 4294901760, %v1011_v36  ;;  %4345 = vmatprep.subr.bf16.mxu1 %v4647_v33  ;;  %3905 = vmatprep.mubr.msk.f32.mxu1 %vm4648_vm6, %v5706_v38  ;;  %v1044_v44 = vand.u32 4294901760, %v1012_v40  ;;  %v1047_v45 = vand.u32 4294901760, %v1013_v41  ;;  %v1014_v46 = vld [vmem:[%s4779_s14 + $0x30] sm:$0xff]  ;;  %v1015_v47 = vld [vmem:[%s4779_s14 + $0x38] sm:$0xff]  ;;  %v1016_v52 = vld [vmem:[%s4779_s14 + $0x40] sm:$0xff] }
 0x291   : > { %v4949_v42 = vpack.c.bf16 %v1035_v35, %v1032_v34  ;;  %v1002_v48 = vld [vmem:[#allocation3] sm:$0xff]  ;;  %v1050_v50 = vand.u32 4294901760, %v1014_v46  ;;  %v1053_v51 = vand.u32 4294901760, %v1015_v47  ;;  %v1017_v53 = vld [vmem:[%s4779_s14 + $0x48] sm:$0xff]  ;;  %v4964_v55 = vsub.f32 %v1008_v29, %v1032_v34  ;;  %v1019_v62 = vld [vmem:[%s4779_s14 + $0x58] sm:$0xff]  ;;  %p2523_p1 = scmp.eq.s32.totalorder %s4627_s18, 1 }
 0x292   : > { %v4952_v43 = vpack.c.bf16 %v1041_v39, %v1038_v37  ;;  %v4958_v49 = vpack.c.bf16 %v1047_v45, %v1044_v44  ;;  %v1005_v54 = vadd.f32 %v1002_v48, %v4826_v13  ;;  %v4966_v56 = vsub.f32 %v1009_v31, %v1035_v35  ;;  %v1018_v61 = vld [vmem:[%s4779_s14 + $0x50] sm:$0xff]  ;;  %v1020_v1 = vld [vmem:[%s4779_s14 + $0x60] sm:$0xff]  ;;  %v1021_v13 = vld [vmem:[%s4779_s14 + $0x68] sm:$0xff]  ;;  %s5754_s22 = sld [smem:[#allocation16_spill]]  ;;  %s5755_s20 = sld [smem:[#allocation14_spill]] }
 0x293   : > { %4203 = vmatpush3.bf16.msra.mxu0 %v4949_v42  ;;  %v4969_v57 = vpack.c.bf16 %v1053_v51, %v1050_v50  ;;  %v1056_v58 = vand.u32 4294901760, %v1016_v52  ;;  %v1059_v59 = vand.u32 4294901760, %v1017_v53  ;;  %v4976_v0 = vsub.f32 %v1010_v32, %v1038_v37  ;;  %v1003_v16 = vld [vmem:[#allocation3 + $0x8] sm:$0xff]  ;;  %v1022_v19 = vld [vmem:[%s4779_s14 + $0x70] sm:$0xff]  ;;  %s2524_s2 = scalar_select %p2523_p1, 1, 0 }
 0x294   : > { %4204 = vmatprep.subr.bf16.mxu0 %v4647_v33  ;;  %v4973_v63 = vand.u32 4294901760, %v1005_v54  ;;  %v1062_v2 = vand.u32 4294901760, %v1018_v61  ;;  %v1065_v3 = vand.u32 4294901760, %v1019_v62  ;;  %v1145_v4 = vand.u32 4294901760, %v4964_v55  ;;  %v1023_v20 = vld [vmem:[%s4779_s14 + $0x78] sm:$0xff]  ;;  %v1004_v27 = vld [vmem:[#allocation3 + $0x10] sm:$0xff]  ;;  %s5753_s14 = scalar_lea.vmem %s5697_s9, %s4767_s23 }
 0x295   : > { %v1152_v5 = vand.u32 4294901760, %v4966_v56  ;;  %v4982_v6 = vsub.f32 %v1011_v36, %v1041_v39  ;;  %v4985_v7 = vpack.c.bf16 %v1059_v59, %v1056_v58  ;;  %v4990_v9 = vsub.f32 %v1012_v40, %v1044_v44  ;;  %s2511_s23 = scalar_select %p516_p8, 1, 0 }
 0x296   : > { %v4988_v8 = vsub.f32 %v1005_v54, %v4973_v63  ;;  %v4992_v11 = vsub.f32 %v1013_v41, %v1047_v45  ;;  %v1068_v12 = vand.u32 4294901760, %v1020_v1  ;;  %v1071_v15 = vand.u32 4294901760, %v1021_v13  ;;  %s2525_s27 = scvt.s32.f32 %s2524_s2  ;;  %s3026_s18 = ssub.s32 1, %s5773_s21 }
 0x297   : > { %4206 = vmatpush3.bf16.msra.mxu0 %v4952_v43  ;;  %v4995_v25 = vsub.f32 %v1014_v46, %v1050_v50  ;;  %v4997_v60 = vsub.f32 %v1015_v47, %v1053_v51  ;;  %v4999_v17 = vsub.f32 %v1016_v52, %v1056_v58  ;;  %v1159_v21 = vand.u32 4294901760, %v4976_v0  ;;  %s2512_s24 = scvt.s32.f32 %s2511_s23  ;;  %s3027_s29 = smul.u32 24, %s3026_s18 }
 0x298   : > { %4207 = vmatprep.subr.bf16.mxu0 %v4647_v33  ;;  %v5004_v22 = vsub.f32 %v1017_v53, %v1059_v59  ;;  %v5006_v23 = vpack.c.bf16 %v1065_v3, %v1062_v2  ;;  %v1146_v24 = vsub.f32 %v4964_v55, %v1145_v4  ;;  %v1153_v26 = vsub.f32 %v4966_v56, %v1152_v5 }
 0x299   : > { %v5015_v28 = vsub.f32 %v1018_v61, %v1062_v2  ;;  %v5017_v30 = vsub.f32 %v1019_v62, %v1065_v3  ;;  %v5705_v29 = vand.u32 4294901760, %v4988_v8  ;;  %v1006_v31 = vadd.f32 %v1003_v16, %v4828_v14  ;;  %s3028_s21 = scalar_lea.vmem [#allocation2], %s3027_s29 }
 0x29a   : > { %v5022_v32 = vpack.c.bf16 %v1071_v15, %v1068_v12  ;;  %v5024_v34 = vsub.f32 %v1020_v1, %v1068_v12  ;;  %v1074_v35 = vand.u32 4294901760, %v1022_v19  ;;  %v1077_v36 = vand.u32 4294901760, %v1023_v20 }
 0x29b   : > { %4209 = vmatpush3.bf16.msra.mxu0 %v4958_v49  ;;  %v1160_v37 = vsub.f32 %v4976_v0, %v1159_v21  ;;  %v1166_v39 = vand.u32 4294901760, %v4982_v6  ;;  %v5028_v40 = vand.u32 4294901760, %v1006_v31  ;;  %v1007_v41 = vadd.f32 %v1004_v27, %v4834_v18 }
 0x29c   : > { %4210 = vmatprep.subr.bf16.mxu0 %v4647_v33  ;;  %v1147_v44 = vand.u32 4294901760, %v1146_v24  ;;  %v1154_v45 = vand.u32 4294901760, %v1153_v26  ;;  %v1173_v14 = vand.u32 4294901760, %v4990_v9  ;;  %v1180_v46 = vand.u32 4294901760, %v4992_v11 }
 0x29d   : > { %v5034_v47 = vsub.f32 %v1021_v13, %v1071_v15  ;;  %v1115_v48 = vsub.f32 %v4988_v8, %v5705_v29  ;;  %v5040_v50 = vsub.f32 %v1006_v31, %v5028_v40  ;;  %v5042_v51 = vand.u32 4294901760, %v1007_v41 }
 0x29e   : > { %v5045_v18 = vpack.c.bf16 %v1077_v36, %v1074_v35  ;;  %v5047_v52 = vsub.f32 %v1022_v19, %v1074_v35  ;;  %v5049_v53 = vsub.f32 %v1023_v20, %v1077_v36  ;;  %v1187_v54 = vand.u32 4294901760, %v4995_v25 }
 0x29f   : > { %4212 = vmatpush3.bf16.msra.mxu0 %v4969_v57  ;;  %v1161_v58 = vand.u32 4294901760, %v1160_v37  ;;  %v1167_v59 = vsub.f32 %v4982_v6, %v1166_v39  ;;  %v5704_v61 = vand.u32 4294901760, %v5040_v50  ;;  %v5055_v62 = vsub.f32 %v1007_v41, %v5042_v51 }
 0x2a0   : > { %4213 = vmatprep.subr.bf16.mxu0 %v4647_v33  ;;  %v4226_v1 = vpack.c.bf16 %v1154_v45, %v1147_v44  ;;  %v1174_v13 = vsub.f32 %v4990_v9, %v1173_v14  ;;  %v1181_v2 = vsub.f32 %v4992_v11, %v1180_v46  ;;  %v1194_v3 = vand.u32 4294901760, %v4997_v60 }
 0x2a1   : > { %v1116_v12 = vand.u32 4294901760, %v1115_v48  ;;  %v1201_v15 = vand.u32 4294901760, %v4999_v17  ;;  %v1208_v16 = vand.u32 4294901760, %v5004_v22  ;;  %v1215_v19 = vand.u32 4294901760, %v5015_v28 }
 0x2a2   : > { %v1222_v20 = vand.u32 4294901760, %v5017_v30  ;;  %v1229_v24 = vand.u32 4294901760, %v5024_v34  ;;  %v1236_v26 = vand.u32 4294901760, %v5034_v47  ;;  %v1243_v27 = vand.u32 4294901760, %v5047_v52 }
 0x2a3   : > { %4215 = vmatpush3.bf16.msra.mxu0 %v4985_v7  ;;  %v1125_v31 = vsub.f32 %v5040_v50, %v5704_v61  ;;  %v1250_v36 = vand.u32 4294901760, %v5049_v53  ;;  %v5078_v37 = vpack.c.bf16 %v1152_v5, %v1145_v4  ;;  %v5080_v41 = vpack.c.bf16 %v1166_v39, %v1159_v21 }
 0x2a4   : > { %4216 = vmatprep.subr.bf16.mxu0 %v4647_v33  ;;  %v5082_v44 = vpack.c.bf16 %v1180_v46, %v1173_v14  ;;  %v5084_v45 = vpack.c.bf16 %v1194_v3, %v1187_v54  ;;  %v5086_v48 = vpack.c.bf16 %v1208_v16, %v1201_v15  ;;  %v1168_v61 = vand.u32 4294901760, %v1167_v59 }
 0x2a5   : > { %v5089_v29 = vpack.c.bf16 %v1222_v20, %v1215_v19  ;;  %v5091_v38 = vpack.c.bf16 %v1236_v26, %v1229_v24  ;;  %v5093_v35 = vpack.c.bf16 %v1250_v36, %v1243_v27  ;;  %v1188_v4 = vsub.f32 %v4995_v25, %v1187_v54 }
 0x2a6   : > { %v1126_v5 = vand.u32 4294901760, %v1125_v31  ;;  %v5735_v21 = vand.u32 4294901760, %v5055_v62  ;;  %v4229_v14 = vpack.c.bf16 %v1168_v61, %v1161_v58  ;;  %v1175_v46 = vand.u32 4294901760, %v1174_v13 }
 0x2a7   : > { %4218 = vmatpush3.bf16.msra.mxu0 %v5006_v23  ;;  %5732 = vst [vmem:[#allocation10_spill] sm:$0xff] %v5089_v29  ;;  %5733 = vst [vmem:[#allocation11_spill] sm:$0xff] %v5091_v38  ;;  %v1182_v59 = vand.u32 4294901760, %v1181_v2  ;;  %v1195_v10 = vsub.f32 %v4997_v60, %v1194_v3  ;;  %v5736_v29 = vmov 0.0   ;;  %v1202_v38 = vsub.f32 %v4999_v17, %v1201_v15 }
 0x2a8   : > { %4219 = vmatprep.subr.bf16.mxu0 %v4647_v33  ;;  %5734 = vst [vmem:[#allocation12_spill] sm:$0xff] %v5093_v35  ;;  %v1135_v39 = vsub.f32 %v5055_v62, %v5735_v21  ;;  %v1189_v35 = vand.u32 4294901760, %v1188_v4  ;;  %v1216_v58 = vsub.f32 %v5015_v28, %v1215_v19  ;;  %v1223_v61 = vsub.f32 %v5017_v30, %v1222_v20 }
 0x2a9   : > { %v4232_v54 = vpack.c.bf16 %v1182_v59, %v1175_v46  ;;  %v1196_v31 = vand.u32 4294901760, %v1195_v10  ;;  %v1203_v2 = vand.u32 4294901760, %v1202_v38  ;;  %v1230_v4 = vsub.f32 %v5024_v34, %v1229_v24  ;;  %v1764_v59 = vld [vmem:[%s4784_s0 + $0x18] sm:$0xff] }
 0x2aa   : > { %v1217_v10 = vand.u32 4294901760, %v1216_v58  ;;  %v1224_v15 = vand.u32 4294901760, %v1223_v61  ;;  %v1237_v19 = vsub.f32 %v5034_v47, %v1236_v26  ;;  %v1251_v21 = vsub.f32 %v5049_v53, %v1250_v36 }
 0x2ab   : > { %4221 = vmatpush3.bf16.msra.mxu0 %v5022_v32  ;;  %v4235_v13 = vpack.c.bf16 %v1196_v31, %v1189_v35  ;;  %v1231_v35 = vand.u32 4294901760, %v1230_v4  ;;  %v4250_v26 = vpack.c.bf16 %v4966_v56, %v4964_v55  ;;  %v4256_v55 = vpack.c.bf16 %v4992_v11, %v4990_v9  ;;  %v1761_v56 = vld [vmem:[%s4784_s0] sm:$0xff]  ;;  %v1766_v31 = vld [vmem:[%s4784_s0 + $0x28] sm:$0xff] }
 0x2ac   : > { %4222 = vmatprep.subr.bf16.mxu0 %v4647_v33  ;;  %v4241_v20 = vpack.c.bf16 %v1224_v15, %v1217_v10  ;;  %v1238_v38 = vand.u32 4294901760, %v1237_v19  ;;  %v1252_v46 = vand.u32 4294901760, %v1251_v21  ;;  %v4259_v36 = vpack.c.bf16 %v4997_v60, %v4995_v25 }
 0x2ad   : > { %v1785_v9 = vand.u32 4294901760, %v1761_v56  ;;  %v1800_v61 = vand.u32 4294901760, %v1766_v31  ;;  %v4262_v4 = vpack.c.bf16 %v5004_v22, %v4999_v17 }
 0x2af   : > { %4224 = vmatpush3.bf16.msra.mxu0 %v5045_v18  ;;  %v5154_v25 = vsub.f32 %v1761_v56, %v1785_v9 }
 0x2b0   : > { %4225 = vmatprep.subr.bf16.mxu0 %v4647_v33 }
 0x2b2   : > { %3660 = vmatmul.mubr.f32.vlgmr.msra.gmra.mrb[0].mxu0 %v1116_v12  ;;  %v1136_v12 = vand.u32 4294901760, %v1135_v39  ;;  %v4244_v39 = vpack.c.bf16 %v1238_v38, %v1231_v35  ;;  %v5170_v38 = vsub.f32 %v1766_v31, %v1800_v61 }
 0x2b3   : > { %4227 = vmatpush3.bf16.msra.mxu0 %v4226_v1  ;;  %3662 = vmatprep.mubr.msk.f32.mxu0 %vm4648_vm6, %v5736_v29  ;;  %v1209_v1 = vsub.f32 %v5004_v22, %v1208_v16 }
 0x2b4   : > { %4228 = vmatprep.subr.bf16.mxu0 %v4647_v33 }
 0x2b5   : > { %v1210_v3 = vand.u32 4294901760, %v1209_v1  ;;  %v1794_v1 = vand.u32 4294901760, %v1764_v59 }
 0x2b6   : > { %3663 = vmatmul.mubr.f32.gmra.mrb[2].mxu0 %v1126_v5  ;;  %v1244_v5 = vsub.f32 %v5047_v52, %v1243_v27  ;;  %v4253_v27 = vpack.c.bf16 %v4982_v6, %v4976_v0  ;;  %v1762_v0 = vld [vmem:[%s4784_s0 + $0x8] sm:$0xff]  ;;  %v1763_v6 = vld [vmem:[%s4784_s0 + $0x10] sm:$0xff] }
 0x2b7   : > { %4230 = vmatpush3.bf16.msra.mxu0 %v4229_v14  ;;  %3665 = vmatprep.mubr.msk.f32.mxu0 %vm4648_vm6, %v5736_v29  ;;  %v4238_v16 = vpack.c.bf16 %v1210_v3, %v1203_v2  ;;  %v1788_v11 = vand.u32 4294901760, %v1762_v0  ;;  %v1768_v2 = vld [vmem:[%s4784_s0 + $0x38] sm:$0xff]  ;;  %v1769_v3 = vld [vmem:[%s4784_s0 + $0x40] sm:$0xff] }
 0x2b8   : > { %4231 = vmatprep.subr.bf16.mxu0 %v4647_v33  ;;  %v1245_v14 = vand.u32 4294901760, %v1244_v5  ;;  %v1806_v21 = vand.u32 4294901760, %v1768_v2 }
 0x2b9   : > { %v5152_v10 = vpack.c.bf16 %v1788_v11, %v1785_v9  ;;  %v5156_v60 = vsub.f32 %v1762_v0, %v1788_v11 }
 0x2ba   : > { %3666 = vmatmul.mubr.f32.gmra.mrb[4].mxu0 %v1136_v12  ;;  %v4247_v24 = vpack.c.bf16 %v1252_v46, %v1245_v14  ;;  %v1791_v12 = vand.u32 4294901760, %v1763_v6  ;;  %v5176_v22 = vsub.f32 %v1768_v2, %v1806_v21 }
 0x2bb   : > { %4233 = vmatpush3.bf16.msra.mxu0 %v4232_v54  ;;  %3700 = vmatprep.mubr.msk.f32.mxu0 %vm4648_vm6, %v5736_v29  ;;  %v1765_v54 = vld [vmem:[%s4784_s0 + $0x20] sm:$0xff]  ;;  %v1905_v0 = vand.u32 4294901760, %v5156_v60 }
 0x2bc   : > { %4234 = vmatprep.subr.bf16.mxu0 %v4647_v33  ;;  %v1797_v58 = vand.u32 4294901760, %v1765_v54  ;;  %v5158_v15 = vsub.f32 %v1763_v6, %v1791_v12  ;;  %v5163_v19 = vpack.c.bf16 %v1794_v1, %v1791_v12  ;;  %4347 = vmatpush3.bf16.msra.mxu1 %v5152_v10 }
 0x2bd   : > { %4348 = vmatprep.subr.bf16.mxu1 %v4647_v33  ;;  %v1906_v9 = vsub.f32 %v5156_v60, %v1905_v0 }
 0x2be   : > { %v5167_v35 = vsub.f32 %v1765_v54, %v1797_v58  ;;  %v1912_v31 = vand.u32 4294901760, %v5158_v15 }
 0x2bf   : > { %4236 = vmatpush3.bf16.msra.mxu0 %v4235_v13  ;;  %v1767_v13 = vld [vmem:[%s4784_s0 + $0x30] sm:$0xff]  ;;  %v1907_v54 = vand.u32 4294901760, %v1906_v9 }
 0x2c0   : > { %4237 = vmatprep.subr.bf16.mxu0 %v4647_v33  ;;  %v1803_v5 = vand.u32 4294901760, %v1767_v13  ;;  %4350 = vmatpush3.bf16.msra.mxu1 %v5163_v19 }
 0x2c1   : > { %4351 = vmatprep.subr.bf16.mxu1 %v4647_v33 }
 0x2c2   : > { %v5174_v17 = vsub.f32 %v1767_v13, %v1803_v5  ;;  %v5192_v56 = vpack.c.bf16 %v1806_v21, %v1803_v5  ;;  %v1926_v5 = vand.u32 4294901760, %v5167_v35  ;;  %v1933_v21 = vand.u32 4294901760, %v5170_v38 }
 0x2c3   : > { %4239 = vmatpush3.bf16.msra.mxu0 %v4238_v16  ;;  %v1770_v16 = vld [vmem:[%s4784_s0 + $0x48] sm:$0xff] }
 0x2c4   : > { %4240 = vmatprep.subr.bf16.mxu0 %v4647_v33  ;;  %v1812_v14 = vand.u32 4294901760, %v1770_v16 }
 0x2c7   : > { %4242 = vmatpush3.bf16.msra.mxu0 %v4241_v20  ;;  %v5165_v20 = vsub.f32 %v1764_v59, %v1794_v1 }
 0x2c8   : > { %4243 = vmatprep.subr.bf16.mxu0 %v4647_v33 }
 0x2c9   : > { %v1919_v1 = vand.u32 4294901760, %v5165_v20 }
 0x2cb   : > { %4245 = vmatpush3.bf16.msra.mxu0 %v4244_v39  ;;  %v1809_v39 = vand.u32 4294901760, %v1769_v3  ;;  %v1920_v13 = vsub.f32 %v5165_v20, %v1919_v1 }
 0x2cc   : > { %4246 = vmatprep.subr.bf16.mxu0 %v4647_v33 }
 0x2cd   : > { %v5178_v46 = vsub.f32 %v1769_v3, %v1809_v39 }
 0x2cf   : > { %4248 = vmatpush3.bf16.msra.mxu0 %v4247_v24  ;;  %v5180_v24 = vsub.f32 %v1770_v16, %v1812_v14 }
 0x2d0   : > { %4249 = vmatprep.subr.bf16.mxu0 %v4647_v33 }
 0x2d2   : > { %3701 = vmatmul.mubr.f32.vlgmr.msra.gmra.mrb[0].mxu0 %v4973_v63 }
 0x2d3   : > { %4251 = vmatpush3.bf16.msra.mxu0 %v4250_v26  ;;  %3703 = vmatprep.mubr.msk.f32.mxu0 %vm4648_vm6, %v5736_v29  ;;  %v4265_v26 = vpack.c.bf16 %v5017_v30, %v5015_v28  ;;  %v4271_v28 = vpack.c.bf16 %v5049_v53, %v5047_v52  ;;  %v5199_v30 = vpack.c.bf16 %v1812_v14, %v1809_v39  ;;  %v5741_v52 = vld [vmem:[#allocation11_spill] sm:$0xff]  ;;  %v5742_v53 = vld [vmem:[#allocation12_spill] sm:$0xff] }
 0x2d4   : > { %4252 = vmatprep.subr.bf16.mxu0 %v4647_v33  ;;  %v1927_v14 = vsub.f32 %v5167_v35, %v1926_v5 }
 0x2d6   : > { %3704 = vmatmul.mubr.f32.gmra.mrb[2].mxu0 %v5028_v40 }
 0x2d7   : > { %4254 = vmatpush3.bf16.msra.mxu0 %v4253_v27  ;;  %3706 = vmatprep.mubr.msk.f32.mxu0 %vm4648_vm6, %v5736_v29  ;;  %v5185_v27 = vpack.c.bf16 %v1800_v61, %v1797_v58  ;;  %v1913_v61 = vsub.f32 %v5158_v15, %v1912_v31 }
 0x2d8   : > { %4255 = vmatprep.subr.bf16.mxu0 %v4647_v33 }
 0x2d9   : > { %4353 = vmatpush3.bf16.msra.mxu1 %v5185_v27  ;;  %v1914_v16 = vand.u32 4294901760, %v1913_v61 }
 0x2da   : > { %3707 = vmatmul.mubr.f32.gmra.mrb[4].mxu0 %v5042_v51  ;;  %4354 = vmatprep.subr.bf16.mxu1 %v4647_v33 }
 0x2db   : > { %4257 = vmatpush3.bf16.msra.mxu0 %v4256_v55  ;;  %3741 = vmatprep.mubr.msk.f32.mxu0 %vm4648_vm6, %v5736_v29  ;;  %v4268_v55 = vpack.c.bf16 %v5034_v47, %v5024_v34  ;;  %v5737_v34 = vand.u32 4294901760, %v4988_v8  ;;  %v5738_v47 = vand.u32 4294901760, %v5040_v50 }
 0x2dc   : > { %4258 = vmatprep.subr.bf16.mxu0 %v4647_v33 }
 0x2dd   : > { %4356 = vmatpush3.bf16.msra.mxu1 %v5192_v56 }
 0x2de   : > { %4357 = vmatprep.subr.bf16.mxu1 %v4647_v33 }
 0x2df   : > { %4260 = vmatpush3.bf16.msra.mxu0 %v4259_v36 }
 0x2e0   : > { %4261 = vmatprep.subr.bf16.mxu0 %v4647_v33 }
 0x2e1   : > { %4359 = vmatpush3.bf16.msra.mxu1 %v5199_v30 }
 0x2e2   : > { %4360 = vmatprep.subr.bf16.mxu1 %v4647_v33 }
 0x2e3   : > { %4263 = vmatpush3.bf16.msra.mxu0 %v4262_v4  ;;  %v1921_v4 = vand.u32 4294901760, %v1920_v13 }
 0x2e4   : > { %4264 = vmatprep.subr.bf16.mxu0 %v4647_v33 }
 0x2e5   : > { %v5343_v39 = vpack.c.bf16 %v1921_v4, %v1914_v16 }
 0x2e7   : > { %4266 = vmatpush3.bf16.msra.mxu0 %v4265_v26  ;;  %v1934_v26 = vsub.f32 %v5170_v38, %v1933_v21 }
 0x2e8   : > { %4267 = vmatprep.subr.bf16.mxu0 %v4647_v33 }
 0x2eb   : > { %4269 = vmatpush3.bf16.msra.mxu0 %v4268_v55  ;;  %v1928_v55 = vand.u32 4294901760, %v1927_v14 }
 0x2ec   : > { %4270 = vmatprep.subr.bf16.mxu0 %v4647_v33 }
 0x2ef   : > { %4272 = vmatpush3.bf16.msra.mxu0 %v4271_v28  ;;  %v1935_v28 = vand.u32 4294901760, %v1934_v26 }
 0x2f0   : > { %4273 = vmatprep.subr.bf16.mxu0 %v4647_v33 }
 0x2f2   : > { %3742 = vmatmul.mubr.f32.vlgmr.msra.gmra.mrb[0].mxu0 %v4988_v8  ;;  %v5739_v8 = vand.u32 4294901760, %v5055_v62 }
 0x2f3   : > { %4275 = vmatpush3.bf16.msra.mxu0 %v4949_v42  ;;  %3744 = vmatprep.mubr.msk.f32.mxu0 %vm4648_vm6, %v5736_v29 }
 0x2f4   : > { %4276 = vmatprep.subr.bf16.mxu0 %v4647_v33 }
 0x2f6   : > { %3745 = vmatmul.mubr.f32.gmra.mrb[2].mxu0 %v5040_v50  ;;  %v5740_v50 = vld [vmem:[#allocation10_spill] sm:$0xff] }
 0x2f7   : > { %4278 = vmatpush3.bf16.msra.mxu0 %v4952_v43  ;;  %3747 = vmatprep.mubr.msk.f32.mxu0 %vm4648_vm6, %v5736_v29 }
 0x2f8   : > { %4279 = vmatprep.subr.bf16.mxu0 %v4647_v33 }
 0x2fa   : > { %3748 = vmatmul.mubr.f32.gmra.mrb[4].mxu0 %v5055_v62  ;;  %v1776_v62 = vld [vmem:[%s4784_s0 + $0x78] sm:$0xff] }
 0x2fb   : > { %4281 = vmatpush3.bf16.msra.mxu0 %v4958_v49  ;;  %3782 = vmatprep.mubr.msk.f32.mxu0 %vm4648_vm6, %v5736_v29 }
 0x2fc   : > { %4282 = vmatprep.subr.bf16.mxu0 %v4647_v33 }
 0x2ff   : > { %4284 = vmatpush3.bf16.msra.mxu0 %v4969_v57 }
 0x300   : > { %4285 = vmatprep.subr.bf16.mxu0 %v4647_v33 }
 0x303   : > { %4287 = vmatpush3.bf16.msra.mxu0 %v4985_v7 }
 0x304   : > { %4288 = vmatprep.subr.bf16.mxu0 %v4647_v33 }
 0x307   : > { %4290 = vmatpush3.bf16.msra.mxu0 %v5006_v23 }
 0x308   : > { %4291 = vmatprep.subr.bf16.mxu0 %v4647_v33 }
 0x30b   : > { %4293 = vmatpush3.bf16.msra.mxu0 %v5022_v32 }
 0x30c   : > { %4294 = vmatprep.subr.bf16.mxu0 %v4647_v33 }
 0x30f   : > { %4296 = vmatpush3.bf16.msra.mxu0 %v5045_v18 }
 0x310   : > { %4297 = vmatprep.subr.bf16.mxu0 %v4647_v33 }
 0x312   : > { %3783 = vmatmul.mubr.f32.vlgmr.msra.gmra.mrb[0].mxu0 %v5737_v34  ;;  %v5718_v34 = vand.u32 4294901760, %v5174_v17 }
 0x313   : > { %4299 = vmatpush3.bf16.msra.mxu0 %v5078_v37  ;;  %3785 = vmatprep.mubr.msk.f32.mxu0 %vm4648_vm6, %v5736_v29 }
 0x314   : > { %4300 = vmatprep.subr.bf16.mxu0 %v4647_v33 }
 0x316   : > { %3786 = vmatmul.mubr.f32.gmra.mrb[2].mxu0 %v5738_v47  ;;  %v5717_v47 = vand.u32 4294901760, %v5176_v22 }
 0x317   : > { %4302 = vmatpush3.bf16.msra.mxu0 %v5080_v41  ;;  %3788 = vmatprep.mubr.msk.f32.mxu0 %vm4648_vm6, %v5736_v29 }
 0x318   : > { %4303 = vmatprep.subr.bf16.mxu0 %v4647_v33 }
 0x31a   : > { %3789 = vmatmul.mubr.f32.gmra.mrb[4].mxu0 %v5739_v8  ;;  %v5353_v8 = vpack.c.bf16 %v1935_v28, %v1928_v55 }
 0x31b   : > { %4305 = vmatpush3.bf16.msra.mxu0 %v5082_v44  ;;  %3823 = vmatprep.mubr.msk.f32.mxu0 %vm4648_vm6, %v5736_v29 }
 0x31c   : > { %4306 = vmatprep.subr.bf16.mxu0 %v4647_v33 }
 0x31f   : > { %4308 = vmatpush3.bf16.msra.mxu0 %v5084_v45  ;;  %v1830_v45 = vand.u32 4294901760, %v1776_v62 }
 0x320   : > { %4309 = vmatprep.subr.bf16.mxu0 %v4647_v33 }
 0x321   : > { %v5339_v3 = vsub.f32 %v1776_v62, %v1830_v45 }
 0x323   : > { %4311 = vmatpush3.bf16.msra.mxu0 %v5086_v48  ;;  %v1898_v48 = vand.u32 4294901760, %v5154_v25  ;;  %v5709_v28 = vand.u32 4294901760, %v5339_v3 }
 0x324   : > { %4312 = vmatprep.subr.bf16.mxu0 %v4647_v33 }
 0x325   : > { %v1899_v36 = vsub.f32 %v5154_v25, %v1898_v48 }
 0x327   : > { %4314 = vmatpush3.bf16.msra.mxu0 %v5740_v50  ;;  %v1900_v12 = vand.u32 4294901760, %v1899_v36  ;;  %v1941_v50 = vsub.f32 %v5174_v17, %v5718_v34 }
 0x328   : > { %4315 = vmatprep.subr.bf16.mxu0 %v4647_v33 }
 0x329   : > { %v5329_v58 = vpack.c.bf16 %v1907_v54, %v1900_v12 }
 0x32b   : > { %4317 = vmatpush3.bf16.msra.mxu0 %v5741_v52  ;;  %v1948_v52 = vsub.f32 %v5176_v22, %v5717_v47 }
 0x32c   : > { %4318 = vmatprep.subr.bf16.mxu0 %v4647_v33 }
 0x32f   : > { %4320 = vmatpush3.bf16.msra.mxu0 %v5742_v53  ;;  %v1942_v53 = vand.u32 4294901760, %v1941_v50 }
 0x330   : > { %4321 = vmatprep.subr.bf16.mxu0 %v4647_v33 }
 0x332   : > { %3824 = vmatmul.mubr.f32.vlgmr.msra.gmra.mrb[0].mxu0 %v4973_v63 }
 0x333   : > { %4323 = vmatpush3.bf16.msra.mxu0 %v4949_v42  ;;  %3826 = vmatprep.mubr.msk.f32.mxu0 %vm4648_vm6, %v5736_v29  ;;  %v1771_v42 = vld [vmem:[%s4784_s0 + $0x50] sm:$0xff] }
 0x334   : > { %4324 = vmatprep.subr.bf16.mxu0 %v4647_v33 }
 0x336   : > { %3827 = vmatmul.mubr.f32.gmra.mrb[2].mxu0 %v5028_v40 }
 0x337   : > { %4326 = vmatpush3.bf16.msra.mxu0 %v4952_v43  ;;  %3829 = vmatprep.mubr.msk.f32.mxu0 %vm4648_vm6, %v5736_v29  ;;  %v1772_v43 = vld [vmem:[%s4784_s0 + $0x58] sm:$0xff] }
 0x338   : > { %4327 = vmatprep.subr.bf16.mxu0 %v4647_v33 }
 0x33a   : > { %3830 = vmatmul.mubr.f32.gmra.mrb[4].mxu0 %v5042_v51 }
 0x33b   : > { %4329 = vmatpush3.bf16.msra.mxu0 %v4958_v49  ;;  %3864 = vmatprep.mubr.msk.f32.mxu0 %vm4648_vm6, %v5736_v29  ;;  %v1815_v49 = vand.u32 4294901760, %v1771_v42 }
 0x33c   : > { %4330 = vmatprep.subr.bf16.mxu0 %v4647_v33 }
 0x33d   : > { %v5305_v37 = vsub.f32 %v1771_v42, %v1815_v49  ;;  %v1949_v42 = vand.u32 4294901760, %v1948_v52 }
 0x33f   : > { %4332 = vmatpush3.bf16.msra.mxu0 %v4969_v57  ;;  %v1818_v57 = vand.u32 4294901760, %v1772_v43 }
 0x340   : > { %4333 = vmatprep.subr.bf16.mxu0 %v4647_v33 }
 0x341   : > { %v5307_v41 = vsub.f32 %v1772_v43, %v1818_v57  ;;  %v5716_v43 = vand.u32 4294901760, %v5178_v46 }
 0x343   : > { %4335 = vmatpush3.bf16.msra.mxu0 %v4985_v7  ;;  %v1773_v7 = vld [vmem:[%s4784_s0 + $0x60] sm:$0xff]  ;;  %v5713_v62 = vand.u32 4294901760, %v5307_v41 }
 0x344   : > { %4336 = vmatprep.subr.bf16.mxu0 %v4647_v33 }
 0x345   : > { %v1976_v36 = vsub.f32 %v5307_v41, %v5713_v62 }
 0x347   : > { %4338 = vmatpush3.bf16.msra.mxu0 %v5006_v23  ;;  %v1774_v23 = vld [vmem:[%s4784_s0 + $0x68] sm:$0xff]  ;;  %v1977_v12 = vand.u32 4294901760, %v1976_v36  ;;  %v4403_v36 = vpack.c.bf16 %v5176_v22, %v5174_v17 }
 0x348   : > { %4339 = vmatprep.subr.bf16.mxu0 %v4647_v33 }
 0x34b   : > { %4341 = vmatpush3.bf16.msra.mxu0 %v5022_v32  ;;  %v1821_v32 = vand.u32 4294901760, %v1773_v7 }
 0x34c   : > { %4342 = vmatprep.subr.bf16.mxu0 %v4647_v33 }
 0x34d   : > { %v5321_v11 = vsub.f32 %v1773_v7, %v1821_v32  ;;  %v1955_v7 = vsub.f32 %v5178_v46, %v5716_v43 }
 0x34f   : > { %4344 = vmatpush3.bf16.msra.mxu0 %v5045_v18  ;;  %v5712_v54 = vand.u32 4294901760, %v5321_v11 }
 0x350   : > { %4498 = vmatprep.subr.bf16.mxu0 %v4647_v33 }
 0x351   : > { %v1983_v16 = vsub.f32 %v5321_v11, %v5712_v54 }
 0x352   : > { %3865 = vmatmul.mubr.f32.vlgmr.msra.gmra.mrb[0].mxu0 %v4973_v63  ;;  %v5295_v63 = vpack.c.bf16 %v1818_v57, %v1815_v49  ;;  %v5715_v49 = vand.u32 4294901760, %v5180_v24  ;;  %v5363_v57 = vpack.c.bf16 %v1949_v42, %v1942_v53  ;;  %v2004_v53 = vsub.f32 %v5339_v3, %v5709_v28 }
 0x353   : > { %3867 = vmatprep.mubr.msk.f32.mxu0 %vm4648_vm6, %v5736_v29  ;;  %v1984_v14 = vand.u32 4294901760, %v1983_v16 }
 0x354   : > { %4362 = vmatpush3.bf16.msra.mxu1 %v5295_v63 }
 0x355   : > { %4363 = vmatprep.subr.bf16.mxu1 %v4647_v33 }
 0x356   : > { %3868 = vmatmul.mubr.f32.gmra.mrb[2].mxu0 %v5028_v40  ;;  %v1824_v40 = vand.u32 4294901760, %v1774_v23 }
 0x357   : > { %3870 = vmatprep.mubr.msk.f32.mxu0 %vm4648_vm6, %v5736_v29 }
 0x358   : > { %v5301_v18 = vpack.c.bf16 %v1824_v40, %v1821_v32  ;;  %v5323_v59 = vsub.f32 %v1774_v23, %v1824_v40  ;;  %v1962_v23 = vsub.f32 %v5180_v24, %v5715_v49  ;;  %v1956_v32 = vand.u32 4294901760, %v1955_v7 }
 0x359   : > { %v2005_v7 = vand.u32 4294901760, %v2004_v53 }
 0x35a   : > { %3871 = vmatmul.mubr.f32.gmra.mrb[4].mxu0 %v5042_v51  ;;  %v1775_v51 = vld [vmem:[%s4784_s0 + $0x70] sm:$0xff]  ;;  %4365 = vmatpush3.bf16.msra.mxu1 %v5301_v18  ;;  %v1963_v40 = vand.u32 4294901760, %v1962_v23  ;;  %v5711_v61 = vand.u32 4294901760, %v5323_v59  ;;  %v4412_v16 = vpack.c.bf16 %v5323_v59, %v5321_v11 }
 0x35b   : > { %4152 = vmatprep.mubr.msk.f32.mxu0 %vm4648_vm6, %v5736_v29  ;;  %v1827_v44 = vand.u32 4294901760, %v1775_v51  ;;  %4366 = vmatprep.subr.bf16.mxu1 %v4647_v33 }
 0x35c   : > { %v1990_v4 = vsub.f32 %v5323_v59, %v5711_v61 }
 0x35d   : > { %v5313_v6 = vpack.c.bf16 %v1830_v45, %v1827_v44  ;;  %v5337_v2 = vsub.f32 %v1775_v51, %v1827_v44  ;;  %v5714_v51 = vand.u32 4294901760, %v5305_v37  ;;  %v5373_v44 = vpack.c.bf16 %v1963_v40, %v1956_v32 }
 0x35e   : > { %v1991_v26 = vand.u32 4294901760, %v1990_v4  ;;  %v4394_v32 = vpack.c.bf16 %v5156_v60, %v5154_v25  ;;  %v4397_v40 = vpack.c.bf16 %v5165_v20, %v5158_v15  ;;  %v4448_v25 = vpack.c.bf16 %v1933_v21, %v1926_v5 }
 0x35f   : > { %4368 = vmatpush3.bf16.msra.mxu1 %v5313_v6  ;;  %v1969_v45 = vsub.f32 %v5305_v37, %v5714_v51  ;;  %v5710_v55 = vand.u32 4294901760, %v5337_v2  ;;  %v4415_v4 = vpack.c.bf16 %v5339_v3, %v5337_v2  ;;  %v5743_v60 = vand.u32 4294901760, %v5174_v17 }
 0x360   : > { %4369 = vmatprep.subr.bf16.mxu1 %v4647_v33  ;;  %v4388_v50 = vpack.c.bf16 %v1991_v26, %v1984_v14  ;;  %v3255_v14 = vld [vmem:[%s498_s30] ss:$0 sm:$0xff]  ;;  %v5744_v15 = vand.u32 4294901760, %v5176_v22  ;;  %v5748_v17 = vand.u32 4294901760, %v5307_v41 }
 0x361   : > { %v1970_v9 = vand.u32 4294901760, %v1969_v45  ;;  %v1997_v52 = vsub.f32 %v5337_v2, %v5710_v55  ;;  %v4400_v45 = vpack.c.bf16 %v5170_v38, %v5167_v35  ;;  %v5745_v35 = vand.u32 4294901760, %v5178_v46 }
 0x362   : > { %v4451_v20 = vpack.c.bf16 %v5744_v15, %v5743_v60  ;;  %v5746_v38 = vand.u32 4294901760, %v5180_v24  ;;  %v2516_v60 = vstv %s2512_s24  ;;  %v3257_v15 = vld [vmem:[%s5755_s20] ss:$0 sm:$0xff] }
 0x363   : > { %v5383_v13 = vpack.c.bf16 %v1977_v12, %v1970_v9  ;;  %v1998_v42 = vand.u32 4294901760, %v1997_v52  ;;  %v4406_v9 = vpack.c.bf16 %v5180_v24, %v5178_v46  ;;  %v4409_v12 = vpack.c.bf16 %v5307_v41, %v5305_v37 }
 0x364   : > { %v5751_v46 = vand.u32 4294901760, %v5337_v2  ;;  %v5752_v24 = vand.u32 4294901760, %v5339_v3 }
 0x365   : > { %v4391_v23 = vpack.c.bf16 %v2005_v7, %v1998_v42 }
 0x366   : > { %v4463_v21 = vpack.c.bf16 %v5752_v24, %v5751_v46  ;;  %v2515_v24 = vld [vmem:[%s5754_s22 + $0x10] sm:$0xff] }
 0x425   : > { %v1742_v26 = vpop.f32.mrb[0].mxu0 }
 0x426   : > { %v4507_v52 = vadd.f32 %v3255_v14, %v1742_v26  ;;  %v3866_v53 = vpop.f32.mrb[1].mxu0 }
 0x428   : > { %v1758_v42 = vmax.f32 %v4507_v52, 0.0 }
 0x429   : > { %v1748_v7 = vpop.f32.mrb[2].mxu0 }
 0x42a   : > { %v5420_v28 = vand.u32 4294901760, %v1758_v42  ;;  %v4508_v55 = vadd.f32 %v3255_v14, %v1748_v7  ;;  %v3869_v61 = vpop.f32.mrb[3].mxu0 }
 0x42c   : > { %v5423_v54 = vsub.f32 %v1758_v42, %v5420_v28  ;;  %v1759_v62 = vmax.f32 %v4508_v55, 0.0 }
 0x42d   : > { %v1754_v51 = vpop.f32.mrb[4].mxu0 }
 0x42e   : > { %v5425_v49 = vand.u32 4294901760, %v1759_v62  ;;  %v4509_v43 = vadd.f32 %v3255_v14, %v1754_v51  ;;  %v3872_v47 = vpop.f32.mrb[5].mxu0  ;;  %v1867_v34 = vand.u32 4294901760, %v5423_v54 }
 0x430   : > { %v5429_v26 = vsub.f32 %v1759_v62, %v5425_v49  ;;  %v1760_v52 = vmax.f32 %v4509_v43, 0.0  ;;  %v1868_v53 = vsub.f32 %v5423_v54, %v1867_v34 }
 0x432   : > { %v5434_v61 = vand.u32 4294901760, %v1760_v52  ;;  %v1869_v42 = vand.u32 4294901760, %v1868_v53  ;;  %v1877_v55 = vand.u32 4294901760, %v5429_v26 }
 0x434   : > { %v5438_v7 = vsub.f32 %v1760_v52, %v5434_v61  ;;  %3906 = vmatmul.mubr.f32.vlgmr.msra.gmra.mrb[0].mxu1 %v1869_v42  ;;  %v1878_v47 = vsub.f32 %v5429_v26, %v1877_v55 }
 0x435   : > { %4371 = vmatpush3.bf16.msra.mxu1 %v5329_v58  ;;  %3908 = vmatprep.mubr.msk.f32.mxu1 %vm4648_vm6, %v5736_v29 }
 0x436   : > { %4372 = vmatprep.subr.bf16.mxu1 %v4647_v33  ;;  %v1879_v43 = vand.u32 4294901760, %v1878_v47  ;;  %v1887_v51 = vand.u32 4294901760, %v5438_v7 }
 0x438   : > { %3909 = vmatmul.mubr.f32.gmra.mrb[2].mxu1 %v1879_v43  ;;  %v1888_v62 = vsub.f32 %v5438_v7, %v1887_v51 }
 0x439   : > { %4374 = vmatpush3.bf16.msra.mxu1 %v5343_v39  ;;  %3911 = vmatprep.mubr.msk.f32.mxu1 %vm4648_vm6, %v5736_v29  ;;  %v4442_v39 = vpack.c.bf16 %v1905_v0, %v1898_v48  ;;  %v4454_v48 = vpack.c.bf16 %v5746_v38, %v5745_v35  ;;  %v5747_v0 = vand.u32 4294901760, %v5305_v37  ;;  %v5756_v35 = vld [vmem:[#allocation9_spill] sm:$0xff] }
 0x43a   : > { %4375 = vmatprep.subr.bf16.mxu1 %v4647_v33  ;;  %v1889_v58 = vand.u32 4294901760, %v1888_v62  ;;  %vm2547_vm7 = vcmp.eq.s32.totalorder %v5756_v35, %v3257_v15 }
 0x43b   : > { %v4457_v22 = vpack.c.bf16 %v5748_v17, %v5747_v0 }
 0x43c   : > { %3912 = vmatmul.mubr.f32.gmra.mrb[4].mxu1 %v1889_v58 }
 0x43d   : > { %4377 = vmatpush3.bf16.msra.mxu1 %v5353_v8  ;;  %3946 = vmatprep.mubr.msk.f32.mxu1 %vm4648_vm6, %v5736_v29  ;;  %v4445_v8 = vpack.c.bf16 %v1919_v1, %v1912_v31  ;;  %v5749_v31 = vand.u32 4294901760, %v5321_v11  ;;  %v5750_v1 = vand.u32 4294901760, %v5323_v59 }
 0x43e   : > { %4378 = vmatprep.subr.bf16.mxu1 %v4647_v33 }
 0x43f   : > { %v4460_v5 = vpack.c.bf16 %v5750_v1, %v5749_v31 }
 0x441   : > { %4380 = vmatpush3.bf16.msra.mxu1 %v5363_v57 }
 0x442   : > { %4381 = vmatprep.subr.bf16.mxu1 %v4647_v33 }
 0x445   : > { %4383 = vmatpush3.bf16.msra.mxu1 %v5373_v44 }
 0x446   : > { %4384 = vmatprep.subr.bf16.mxu1 %v4647_v33 }
 0x449   : > { %4386 = vmatpush3.bf16.msra.mxu1 %v5383_v13 }
 0x44a   : > { %4387 = vmatprep.subr.bf16.mxu1 %v4647_v33 }
 0x44d   : > { %4389 = vmatpush3.bf16.msra.mxu1 %v4388_v50 }
 0x44e   : > { %4390 = vmatprep.subr.bf16.mxu1 %v4647_v33 }
 0x451   : > { %4392 = vmatpush3.bf16.msra.mxu1 %v4391_v23 }
 0x452   : > { %4393 = vmatprep.subr.bf16.mxu1 %v4647_v33 }
 0x454   : > { %3947 = vmatmul.mubr.f32.vlgmr.msra.gmra.mrb[6].mxu1 %v5420_v28 }
 0x455   : > { %4395 = vmatpush3.bf16.msra.mxu1 %v4394_v32  ;;  %3949 = vmatprep.mubr.msk.f32.mxu1 %vm4648_vm6, %v5736_v29 }
 0x456   : > { %4396 = vmatprep.subr.bf16.mxu1 %v4647_v33 }
 0x458   : > { %3950 = vmatmul.mubr.f32.gmra.mrb[8].mxu1 %v5425_v49 }
 0x459   : > { %4398 = vmatpush3.bf16.msra.mxu1 %v4397_v40  ;;  %3952 = vmatprep.mubr.msk.f32.mxu1 %vm4648_vm6, %v5736_v29 }
 0x45a   : > { %4399 = vmatprep.subr.bf16.mxu1 %v4647_v33 }
 0x45c   : > { %3953 = vmatmul.mubr.f32.gmra.mrb[10].mxu1 %v5434_v61 }
 0x45d   : > { %4401 = vmatpush3.bf16.msra.mxu1 %v4400_v45  ;;  %3987 = vmatprep.mubr.msk.f32.mxu1 %vm4648_vm6, %v5736_v29 }
 0x45e   : > { %4402 = vmatprep.subr.bf16.mxu1 %v4647_v33 }
 0x461   : > { %4404 = vmatpush3.bf16.msra.mxu1 %v4403_v36 }
 0x462   : > { %4405 = vmatprep.subr.bf16.mxu1 %v4647_v33 }
 0x465   : > { %4407 = vmatpush3.bf16.msra.mxu1 %v4406_v9 }
 0x466   : > { %4408 = vmatprep.subr.bf16.mxu1 %v4647_v33 }
 0x469   : > { %4410 = vmatpush3.bf16.msra.mxu1 %v4409_v12 }
 0x46a   : > { %4411 = vmatprep.subr.bf16.mxu1 %v4647_v33 }
 0x46d   : > { %4413 = vmatpush3.bf16.msra.mxu1 %v4412_v16 }
 0x46e   : > { %4414 = vmatprep.subr.bf16.mxu1 %v4647_v33 }
 0x471   : > { %4416 = vmatpush3.bf16.msra.mxu1 %v4415_v4 }
 0x472   : > { %4417 = vmatprep.subr.bf16.mxu1 %v4647_v33 }
 0x474   : > { %3988 = vmatmul.mubr.f32.vlgmr.msra.gmra.mrb[12].mxu1 %v5423_v54 }
 0x475   : > { %4419 = vmatpush3.bf16.msra.mxu1 %v5152_v10  ;;  %3990 = vmatprep.mubr.msk.f32.mxu1 %vm4648_vm6, %v5736_v29 }
 0x476   : > { %4420 = vmatprep.subr.bf16.mxu1 %v4647_v33 }
 0x478   : > { %3991 = vmatmul.mubr.f32.gmra.mrb[14].mxu1 %v5429_v26 }
 0x479   : > { %4422 = vmatpush3.bf16.msra.mxu1 %v5163_v19  ;;  %3993 = vmatprep.mubr.msk.f32.mxu1 %vm4648_vm6, %v5736_v29 }
 0x47a   : > { %4423 = vmatprep.subr.bf16.mxu1 %v4647_v33 }
 0x47c   : > { %3994 = vmatmul.mubr.f32.gmra.mrb[16].mxu1 %v5438_v7 }
 0x47d   : > { %4425 = vmatpush3.bf16.msra.mxu1 %v5185_v27  ;;  %4028 = vmatprep.mubr.msk.f32.mxu1 %vm4648_vm6, %v5736_v29 }
 0x47e   : > { %4426 = vmatprep.subr.bf16.mxu1 %v4647_v33 }
 0x481   : > { %4428 = vmatpush3.bf16.msra.mxu1 %v5192_v56 }
 0x482   : > { %4429 = vmatprep.subr.bf16.mxu1 %v4647_v33 }
 0x485   : > { %4431 = vmatpush3.bf16.msra.mxu1 %v5199_v30 }
 0x486   : > { %4432 = vmatprep.subr.bf16.mxu1 %v4647_v33 }
 0x489   : > { %4434 = vmatpush3.bf16.msra.mxu1 %v5295_v63 }
 0x48a   : > { %4435 = vmatprep.subr.bf16.mxu1 %v4647_v33 }
 0x48d   : > { %4437 = vmatpush3.bf16.msra.mxu1 %v5301_v18 }
 0x48e   : > { %4438 = vmatprep.subr.bf16.mxu1 %v4647_v33 }
 0x491   : > { %4440 = vmatpush3.bf16.msra.mxu1 %v5313_v6 }
 0x492   : > { %4441 = vmatprep.subr.bf16.mxu1 %v4647_v33 }
 0x494   : > { %4029 = vmatmul.mubr.f32.vlgmr.msra.gmra.mrb[18].mxu1 %v1867_v34 }
 0x495   : > { %4443 = vmatpush3.bf16.msra.mxu1 %v4442_v39  ;;  %4031 = vmatprep.mubr.msk.f32.mxu1 %vm4648_vm6, %v5736_v29 }
 0x496   : > { %4444 = vmatprep.subr.bf16.mxu1 %v4647_v33 }
 0x498   : > { %4032 = vmatmul.mubr.f32.gmra.mrb[20].mxu1 %v1877_v55 }
 0x499   : > { %4446 = vmatpush3.bf16.msra.mxu1 %v4445_v8  ;;  %4034 = vmatprep.mubr.msk.f32.mxu1 %vm4648_vm6, %v5736_v29 }
 0x49a   : > { %4447 = vmatprep.subr.bf16.mxu1 %v4647_v33 }
 0x49c   : > { %4035 = vmatmul.mubr.f32.gmra.mrb[22].mxu1 %v1887_v51 }
 0x49d   : > { %4449 = vmatpush3.bf16.msra.mxu1 %v4448_v25  ;;  %4069 = vmatprep.mubr.msk.f32.mxu1 %vm4648_vm6, %v5736_v29  ;;  %v2513_v25 = vld [vmem:[%s5754_s22] sm:$0xff] }
 0x49e   : > { %4450 = vmatprep.subr.bf16.mxu1 %v4647_v33 }
 0x4a1   : > { %4452 = vmatpush3.bf16.msra.mxu1 %v4451_v20  ;;  %v2517_v20 = vmul.f32 %v2516_v60, %v2513_v25 }
 0x4a2   : > { %4453 = vmatprep.subr.bf16.mxu1 %v4647_v33 }
 0x4a5   : > { %4455 = vmatpush3.bf16.msra.mxu1 %v4454_v48  ;;  %v2514_v48 = vld [vmem:[%s5754_s22 + $0x8] sm:$0xff] }
 0x4a6   : > { %4456 = vmatprep.subr.bf16.mxu1 %v4647_v33  ;;  %v2518_v1 = vmul.f32 %v2516_v60, %v2514_v48 }
 0x4a9   : > { %4458 = vmatpush3.bf16.msra.mxu1 %v4457_v22  ;;  %v5633_v22 = vsel %vm2547_vm7, 1.0, %v5736_v29 }
 0x4aa   : > { %4459 = vmatprep.subr.bf16.mxu1 %v4647_v33 }
 0x4ad   : > { %4461 = vmatpush3.bf16.msra.mxu1 %v4460_v5  ;;  %v2532_v5 = vstv %s2525_s27 }
 0x4ae   : > { %4462 = vmatprep.subr.bf16.mxu1 %v4647_v33 }
 0x4b1   : > { %4464 = vmatpush3.bf16.msra.mxu1 %v4463_v21 }
 0x4b2   : > { %4465 = vmatprep.subr.bf16.mxu1 %v4647_v33 }
 0x4b4   : > { %4070 = vmatmul.mubr.f32.vlgmr.msra.gmra.mrb[24].mxu1 %v5420_v28 }
 0x4b5   : > { %4467 = vmatpush3.bf16.msra.mxu1 %v5152_v10  ;;  %4072 = vmatprep.mubr.msk.f32.mxu1 %vm4648_vm6, %v5736_v29 }
 0x4b6   : > { %4468 = vmatprep.subr.bf16.mxu1 %v4647_v33 }
 0x4b8   : > { %4073 = vmatmul.mubr.f32.gmra.mrb[26].mxu1 %v5425_v49 }
 0x4b9   : > { %4470 = vmatpush3.bf16.msra.mxu1 %v5163_v19  ;;  %4075 = vmatprep.mubr.msk.f32.mxu1 %vm4648_vm6, %v5736_v29 }
 0x4ba   : > { %4471 = vmatprep.subr.bf16.mxu1 %v4647_v33 }
 0x4bc   : > { %4076 = vmatmul.mubr.f32.gmra.mrb[28].mxu1 %v5434_v61 }
 0x4bd   : > { %4473 = vmatpush3.bf16.msra.mxu1 %v5185_v27  ;;  %4110 = vmatprep.mubr.msk.f32.mxu1 %vm4648_vm6, %v5736_v29 }
 0x4be   : > { %4474 = vmatprep.subr.bf16.mxu1 %v4647_v33 }
 0x4c1   : > { %4476 = vmatpush3.bf16.msra.mxu1 %v5192_v56 }
 0x4c2   : > { %4477 = vmatprep.subr.bf16.mxu1 %v4647_v33 }
 0x4c5   : > { %4479 = vmatpush3.bf16.msra.mxu1 %v5199_v30 }
 0x4c6   : > { %4480 = vmatprep.subr.bf16.mxu1 %v4647_v33 }
 0x4c9   : > { %4482 = vmatpush3.bf16.msra.mxu1 %v5295_v63 }
 0x4ca   : > { %4483 = vmatprep.subr.bf16.mxu1 %v4647_v33 }
 0x4cd   : > { %4485 = vmatpush3.bf16.msra.mxu1 %v5301_v18  ;;  %v3256_v18 = vld [vmem:[%s5753_s14] ss:$0 sm:$0xff] }
 0x4ce   : > { %4486 = vmatprep.subr.bf16.mxu1 %v4647_v33 }
 0x4d1   : > { %4488 = vmatpush3.bf16.msra.mxu1 %v5313_v6 }
 0x4d2   : > { %4489 = vmatprep.subr.bf16.mxu1 %v4647_v33 }
 0x4d4   : > { %4111 = vmatmul.mubr.f32.vlgmr.msra.gmra.mrb[30].mxu1 %v5420_v28 }
 0x4d5   : > { %4113 = vmatprep.mubr.msk.f32.mxu1 %vm4648_vm6, %v5736_v29 }
 0x4d8   : > { %4114 = vmatmul.mubr.f32.gmra.mrb[32].mxu1 %v5425_v49 }
 0x4d9   : > { %4116 = vmatprep.mubr.msk.f32.mxu1 %vm4648_vm6, %v5736_v29 }
 0x4dc   : > { %4117 = vmatmul.mubr.f32.gmra.mrb[34].mxu1 %v5434_v61 }
 0x4dd   : > { %4125 = vmatprep.mubr.msk.f32.mxu1 %vm4648_vm6, %v5736_v29 }
 0x507   : > { %v1871_v10 = vpop.f32.mrb[0].mxu1 }
 0x508   : > { %v3907_v19 = vpop.f32.mrb[1].mxu1  ;;  %v1872_v37 = vadd.f32 %v3256_v18, %v1871_v10 }
 0x50b   : > { %v1881_v27 = vpop.f32.mrb[2].mxu1 }
 0x50c   : > { %v3910_v56 = vpop.f32.mrb[3].mxu1  ;;  %v1882_v59 = vadd.f32 %v3256_v18, %v1881_v27  ;;  %v2551_v27 = vsel %vm681_vm0, %v5633_v22, 0 }
 0x50f   : > { %v1891_v30 = vpop.f32.mrb[4].mxu1 }
 0x510   : > { %v3913_v63 = vpop.f32.mrb[5].mxu1  ;;  %v1892_v49 = vadd.f32 %v3256_v18, %v1891_v30  ;;  %v2519_v18 = vmul.f32 %v2516_v60, %v2515_v24 }
 0x527   : > { %v2042_v41 = vpop.f32.mrb[6].mxu1 }
 0x528   : > { %v2043_v6 = vadd.f32 %v2042_v41, %v1872_v37  ;;  %v3948_v11 = vpop.f32.mrb[7].mxu1  ;;  %v5640_v41 = vsub.f32 %v2551_v27, %v2551_v27 }
 0x52b   : > { %v2048_v2 = vpop.f32.mrb[8].mxu1 }
 0x52c   : > { %v2049_v3 = vadd.f32 %v2048_v2, %v1882_v59  ;;  %v3951_v34 = vpop.f32.mrb[9].mxu1 }
 0x52f   : > { %v2054_v57 = vpop.f32.mrb[10].mxu1 }
 0x530   : > { %v2055_v44 = vadd.f32 %v2054_v57, %v1892_v49  ;;  %v3954_v54 = vpop.f32.mrb[11].mxu1 }
 0x547   : > { %v2158_v13 = vpop.f32.mrb[12].mxu1 }
 0x548   : > { %v2159_v28 = vadd.f32 %v2158_v13, %v2043_v6  ;;  %v3989_v50 = vpop.f32.mrb[13].mxu1 }
 0x54b   : > { %v2165_v23 = vpop.f32.mrb[14].mxu1 }
 0x54c   : > { %v2166_v32 = vadd.f32 %v2165_v23, %v2049_v3  ;;  %v3992_v40 = vpop.f32.mrb[15].mxu1 }
 0x54f   : > { %v2172_v45 = vpop.f32.mrb[16].mxu1 }
 0x550   : > { %v2173_v36 = vadd.f32 %v2172_v45, %v2055_v44  ;;  %v3995_v9 = vpop.f32.mrb[17].mxu1  ;;  %v2623_v44 = vand.u32 4294901760, %v5640_v41 }
 0x552   : > { %v2624_v45 = vsub.f32 %v5640_v41, %v2623_v44 }
 0x567   : > { %v2261_v12 = vpop.f32.mrb[18].mxu1 }
 0x568   : > { %v2262_v16 = vadd.f32 %v2261_v12, %v2159_v28  ;;  %v4030_v4 = vpop.f32.mrb[19].mxu1 }
 0x56b   : > { %v2269_v14 = vpop.f32.mrb[20].mxu1 }
 0x56c   : > { %v2270_v26 = vadd.f32 %v2269_v14, %v2166_v32  ;;  %v4033_v52 = vpop.f32.mrb[21].mxu1 }
 0x56d   : > { %v2625_v52 = vand.u32 4294901760, %v2624_v45 }
 0x56f   : > { %v2277_v53 = vpop.f32.mrb[22].mxu1 }
 0x570   : > { %v2278_v61 = vadd.f32 %v2277_v53, %v2173_v36  ;;  %v4036_v42 = vpop.f32.mrb[23].mxu1 }
 0x587   : > { %v2396_v55 = vpop.f32.mrb[24].mxu1 }
 0x588   : > { %v2397_v7 = vadd.f32 %v2396_v55, %v2262_v16  ;;  %v4071_v47 = vpop.f32.mrb[25].mxu1 }
 0x58b   : > { %v2402_v43 = vpop.f32.mrb[26].mxu1 }
 0x58c   : > { %v2403_v51 = vadd.f32 %v2402_v43, %v2270_v26  ;;  %v4074_v62 = vpop.f32.mrb[27].mxu1 }
 0x58f   : > { %v2408_v58 = vpop.f32.mrb[28].mxu1 }
 0x590   : > { %v2409_v39 = vadd.f32 %v2408_v58, %v2278_v61  ;;  %v4077_v8 = vpop.f32.mrb[29].mxu1 }
 0x5a7   : > { %v2495_v38 = vpop.f32.mrb[30].mxu1 }
 0x5a8   : > { %v2496_v0 = vadd.f32 %v2495_v38, %v2397_v7  ;;  %v4112_v17 = vpop.f32.mrb[31].mxu1 }
 0x5aa   : > { %v2520_v31 = vadd.f32 %v2517_v20, %v2496_v0 }
 0x5ab   : > { %v2501_v46 = vpop.f32.mrb[32].mxu1 }
 0x5ac   : > { %v2529_v21 = vmin.f32 %v2520_v31, 0.0  ;;  %v2502_v10 = vadd.f32 %v2501_v46, %v2403_v51  ;;  %v4115_v19 = vpop.f32.mrb[33].mxu1  ;;  %v2526_v56 = vmax.f32 %v2520_v31, 0.0 }
 0x5ae   : > { %v2533_v30 = vmul.f32 %v2532_v5, %v2529_v21  ;;  %v2521_v63 = vadd.f32 %v2518_v1, %v2502_v10 }
 0x5af   : > { %v2507_v37 = vpop.f32.mrb[34].mxu1 }
 0x5b0   : > { %v2536_v6 = vadd.f32 %v2533_v30, %v2526_v56  ;;  %v2530_v11 = vmin.f32 %v2521_v63, 0.0  ;;  %v2508_v59 = vadd.f32 %v2507_v37, %v2409_v39  ;;  %v4118_v2 = vpop.f32.mrb[35].mxu1  ;;  %v2527_v3 = vmax.f32 %v2521_v63, 0.0 }
 0x5b2   : > { %2539 = vst [vmem:[%s4795_s26] sm:$0xff] %v2536_v6  ;;  %3029 = vst [vmem:[%s3028_s21] sm:$0xff] %v2536_v6  ;;  %v2534_v34 = vmul.f32 %v2532_v5, %v2530_v11  ;;  %v2522_v49 = vadd.f32 %v2519_v18, %v2508_v59  ;;  %v2554_v57 = vand.u32 4294901760, %v2536_v6 }
 0x5b4   : > { %v2537_v54 = vadd.f32 %v2534_v34, %v2527_v3  ;;  %v2531_v13 = vmin.f32 %v2522_v49, 0.0  ;;  %v2633_v28 = vsub.f32 %v2536_v6, %v2554_v57  ;;  %v2528_v50 = vmax.f32 %v2522_v49, 0.0 }
 0x5b6   : > { %2540 = vst [vmem:[%s4795_s26 + $0x8] sm:$0xff] %v2537_v54  ;;  %3030 = vst [vmem:[%s3028_s21 + $0x8] sm:$0xff] %v2537_v54  ;;  %v2535_v23 = vmul.f32 %v2532_v5, %v2531_v13  ;;  %v2557_v32 = vand.u32 4294901760, %v2537_v54  ;;  %v2634_v40 = vand.u32 4294901760, %v2633_v28 }
 0x5b8   : > { %v2538_v36 = vadd.f32 %v2535_v23, %v2528_v50  ;;  %v4490_v9 = vpack.c.bf16 %v2557_v32, %v2554_v57  ;;  %v2640_v12 = vsub.f32 %v2537_v54, %v2557_v32  ;;  %v2635_v14 = vsub.f32 %v2633_v28, %v2634_v40 }
 0x5ba   : > { %2541 = vst [vmem:[%s4795_s26 + $0x10] sm:$0xff] %v2538_v36  ;;  %3031 = vst [vmem:[%s3028_s21 + $0x10] sm:$0xff] %v2538_v36  ;;  %4491 = vmatpush3.bf16.msra.mxu1 %v4490_v9  ;;  %4500 = vmatpush3.bf16.msra.mxu0 %v4490_v9  ;;  %v2560_v16 = vand.u32 4294901760, %v2538_v36  ;;  %v2641_v4 = vand.u32 4294901760, %v2640_v12  ;;  %v4496_v26 = vpack.c.bf16 %v2640_v12, %v2633_v28  ;;  %v2636_v55 = vand.u32 4294901760, %v2635_v14 }
 0x5bb   : > { %4123 = vmatprep.subr.mxu1 %v5736_v29  ;;  %4150 = vmatprep.subr.mxu0 %v5736_v29 }
 0x5bc   : > { %v4502_v53 = vpack.c.bf16 %v2641_v4, %v2634_v40  ;;  %v2642_v61 = vsub.f32 %v2640_v12, %v2641_v4  ;;  %v2647_v42 = vsub.f32 %v2538_v36, %v2560_v16 }
 0x5be   : > { %4124 = vmatpush3.msra.mxu1 %v2560_v16  ;;  %4151 = vmatpush3.msra.mxu0 %v2560_v16  ;;  %v2643_v7 = vand.u32 4294901760, %v2642_v61  ;;  %v2648_v47 = vand.u32 4294901760, %v2647_v42 }
 0x5bf   : > { %4126 = vmatmul.mubr.f32.vlgmr.msra.gmra.mrb[36].mxu1 %v2625_v52  ;;  %4153 = vmatmul.mubr.f32.vlgmr.msra.gmra.mrb[6].mxu0 %v2623_v44 }
 0x5c0   : > { %4501 = vmatprep.subr.bf16.mxu0 %v4647_v33  ;;  %4492 = vmatprep.subr.bf16.mxu1 %v4647_v33  ;;  %v4493_v43 = vpack.c.bf16 %v2643_v7, %v2636_v55  ;;  %v2649_v51 = vsub.f32 %v2647_v42, %v2648_v47 }
 0x5c1   : > { %4503 = vmatpush3.bf16.msra.mxu0 %v4502_v53  ;;  %4134 = vmatprep.mubr.msk.f32.mxu1 %vm4648_vm6, %v5736_v29 }
 0x5c2   : > { %4494 = vmatpush3.bf16.msra.mxu1 %v4493_v43  ;;  %4159 = vmatprep.subr.mxu0 %v5736_v29  ;;  %v2650_v62 = vand.u32 4294901760, %v2649_v51 }
 0x5c3   : > { %4132 = vmatprep.subr.mxu1 %v5736_v29  ;;  %4161 = vmatprep.mubr.msk.f32.mxu0 %vm4648_vm6, %v5736_v29 }
 0x5c5   : > { %4160 = vmatpush3.msra.mxu0 %v2648_v47 }
 0x5c6   : > { %4133 = vmatpush3.msra.mxu1 %v2650_v62  ;;  %4504 = vmatprep.subr.bf16.mxu0 %v4647_v33 }
 0x5c7   : > { %4135 = vmatmul.mubr.msk.f32.vlgmr.msra.gmra.mrb[36].mxu1 %vm681_vm0, %v5633_v22  ;;  %4495 = vmatprep.subr.bf16.mxu1 %v4647_v33 }
 0x5c8   : > { %4162 = vmatmul.mubr.msk.f32.vlgmr.msra.gmra.mrb[6].mxu0 %vm681_vm0, %v5633_v22  ;;  %4497 = vmatpush3.bf16.msra.mxu1 %v4496_v26 }
 0x5c9   : > { %4506 = vmatpush3.bf16.msra.mxu0 %v4490_v9  ;;  %4141 = vmatprep.subr.mxu1 %v5736_v29 }
 0x5ca   : > { %4168 = vmatprep.subr.mxu0 %v5736_v29  ;;  %4143 = vmatprep.mubr.msk.f32.mxu1 %vm4648_vm6, %v5736_v29 }
 0x5cb   : > { %4170 = vmatprep.mubr.msk.f32.mxu0 %vm4648_vm6, %v5736_v29 }
 0x5cc   : > { %4142 = vmatpush3.msra.mxu1 %v2647_v42 }
 0x5cd   : > { %4169 = vmatpush3.msra.mxu0 %v2560_v16 }
 0x5cf   : > { %4144 = vmatmul.mubr.f32.vlgmr.msra.gmra.mrb[36].mxu1 %v5640_v41 }
 0x5d0   : > { %4171 = vmatmul.mubr.msk.f32.vlgmr.msra.gmra.mrb[6].mxu0 %vm681_vm0, %v5633_v22 }
 0x6a2   : > { %v2791_v33 = vpop.f32.mrb[36].mxu1 }
 0x6a3   : > { %v3021_v58 = vpop.f32.mrb[6].mxu0  ;;  %v4145_v39 = vpop.f32.mrb[37].mxu1 }
 0x6a4   : > { %v4510_v8 = vadd.f32 %v3021_v58, %v2791_v33  ;;  %v4172_v25 = vpop.f32.mrb[7].mxu0 }
 0x6a6   : > { %3025 = vst [vmem:[%s4800_s12] sm:$0xff] %v4510_v8 }
 0x6a7 PF: > { %s5757_s26 = sld [smem:[#allocation6_spill]]  ;;  %s5758_s17 = sld [smem:[#allocation4_spill]] }
 0x6a8   : > { %s5759_s18 = sld [smem:[#allocation5_spill]]  ;;  %s5760_s19 = sld [smem:[#allocation7_spill]] }
 0x6a9   : > { %s5761_s20 = sld [smem:[#allocation8_spill]] }
 0x6ad   : > { %s22_s21 = sadd.s32 1, %s5757_s26  }
 0x6ae   : > { %p19_p2 = scmp.ge.s32.totalorder %s22_s21, 6  }
 0x6b0   :  { %21 = sbr.rel (!%p19_p2) target bundleno = 5 (0x5), region = 134 }

</bundles_post_ra>
